<compile_context>
chip_gen: v7x
topology: tpu7x:2x2x1
jax: 0.10.0
libtpu: 0.0.40
codegen_flags: <defaults>
</compile_context>

<pallas_src>
import jax
import jax.numpy as jnp
from jax import lax
from jax.experimental import pallas as pl
from jax.experimental.pallas import tpu as pltpu

# Small, module-consistent problem sizes.
H = W = 16          # spatial
CIN = 4             # sMRI input channels
COUT = 32           # conv output channels (padded to CP inside the kernel pipeline)
FEAT = 128          # output feature dim (t)
KH = KW = 3         # conv kernel
K = KH * KW * CIN   # im2col contraction dim = 36
KP = 64             # contraction dim padded for MXU/layout alignment (col K is bias lane)
CP = 128            # conv channels padded to a full lane group
CHUNK_B = 8         # batch elements per fused matmul/ReLU/pool chunk (-> M = 2048 rows)


def _round_up(x, m):
    return ((x + m - 1) // m) * m


# --------------------------------------------------------------------------------------
# Pallas kernel: one batch-block per grid step, fused conv->ReLU->GAP->FC.
# --------------------------------------------------------------------------------------
def smri_classifier_kernel(col_ref, wcol_ref, wfc_ref, bfc_ref, out_ref, pooled_ref):
    """
    col_ref   : (BLOCK_B*H*W, KP)  bf16  im2col input slab (column K=36 is the 1.0 bias lane)
    wcol_ref  : (KP, CP)           bf16  conv weights in im2col layout; row 36 = conv bias
    wfc_ref   : (CP, FEAT)         bf16  FC weight, pre-scaled by 1/(H*W) (GAP fold)
    bfc_ref   : (1, FEAT)          f32   FC bias
    out_ref   : (BLOCK_B, FEAT)    f32   output features t for this batch block
    pooled_ref: (BLOCK_B, CP)      f32   VMEM scratch holding the pooled conv features
    """
    block_b = out_ref.shape[0]
    rows = col_ref.shape[0]
    hw = rows // block_b                      # = H*W (static)
    chunk_b = min(CHUNK_B, block_b)           # block_b is a multiple of 8, so this divides
    n_chunks = block_b // chunk_b
    chunk_rows = chunk_b * hw                 # 2048 rows per chunk -> MXU-friendly M

    wcol = wcol_ref[...]                      # hoist: (64, 128) bf16, loaded once per step

    def fused_chunk(r0, b0, cb):
        # Conv (bias folded via ones-column) as one lane-dense bf16 MXU matmul, f32 acc.
        acc = jnp.dot(col_ref[pl.ds(r0, chunk_rows), :], wcol,
                      preferred_element_type=jnp.float32)
        # ReLU on the VPU, then global-sum-pool over the H*W rows of each batch element.
        # The 1/(H*W) scale is folded into wfc on the host.
        acc = jnp.maximum(acc, 0.0)
        pooled_ref[pl.ds(b0, cb), :] = jnp.sum(
            acc.reshape(cb, hw, acc.shape[-1]), axis=1)

    if n_chunks == 1:
        # Small block (e.g. B<=8): single chunk, no loop.
        acc = jnp.maximum(
            jnp.dot(col_ref[...], wcol, preferred_element_type=jnp.float32), 0.0)
        pooled_ref[...] = jnp.sum(acc.reshape(block_b, hw, acc.shape[-1]), axis=1)
    else:
        def body(c, carry):
            r0 = pl.multiple_of(c * chunk_rows, chunk_rows)
            b0 = pl.multiple_of(c * chunk_b, chunk_b)
            fused_chunk(r0, b0, chunk_b)
            return carry
        lax.fori_loop(0, n_chunks, body, 0)

    # Final linear layer: bf16 MXU operands, f32 accumulation + f32 bias.
    feat = jnp.dot(pooled_ref[...].astype(jnp.bfloat16), wfc_ref[...],
                   preferred_element_type=jnp.float32) + bfc_ref[...]
    out_ref[...] = feat


# --------------------------------------------------------------------------------------
# Wrapper-side layout plumbing (fused bf16 transform feeding lane-dense tiles).
# --------------------------------------------------------------------------------------
def _im2col_nchw(x_nchw):
    """NCHW -> padded NHWC (bf16) -> (B, H*W, KP) im2col slab.
    Column K (=36) is set to 1.0 so the conv bias can be folded into the matmul."""
    B = x_nchw.shape[0]
    x = jnp.transpose(x_nchw, (0, 2, 3, 1)).astype(jnp.bfloat16)      # (B, H, W, CIN) bf16
    xp = jnp.pad(x, ((0, 0), (1, 1), (1, 1), (0, 0)))                 # "same" padding
    taps = [xp[:, ky:ky + H, kx:kx + W, :] for ky in range(KH) for kx in range(KW)]
    col = jnp.concatenate(taps, axis=-1).reshape(B, H * W, K)         # (B, H*W, 36) bf16
    ones = jnp.ones((B, H * W, 1), jnp.bfloat16)                      # bias lane
    col = jnp.concatenate([col, ones], axis=-1)                       # (B, H*W, 37)
    return jnp.pad(col, ((0, 0), (0, 0), (0, KP - K - 1)))            # (B, H*W, 64)


def pack_params(params):
    """Host-side repack: im2col weight layout with the conv bias folded into row K,
    COUT->CP pad, bf16 MXU operands, 1/(H*W) GAP scale folded into the FC weight."""
    wcol = params["wconv"].reshape(K, COUT)                           # (36, 32)
    bconv = params["bconv"].reshape(1, COUT)                          # (1, 32)
    wcol = jnp.concatenate([wcol, bconv], axis=0)                     # row 36 = conv bias
    wcol = jnp.pad(wcol, ((0, KP - K - 1), (0, CP - COUT))).astype(jnp.bfloat16)  # (64, 128)
    wfc = jnp.pad(params["wfc"] * (1.0 / (H * W)),
                  ((0, CP - COUT), (0, 0))).astype(jnp.bfloat16)      # (128, FEAT)
    bfc = params["bfc"].astype(jnp.float32)                           # (1, FEAT)
    return wcol, wfc, bfc


def _choose_block_b(B, requested):
    """Batch block: multiple of 8 (sublane alignment).  When the whole batch would fit in
    a single block, split into >= 2 grid steps so v7x's two TensorCores both get work."""
    bb = _round_up(max(1, min(requested, B)), 8)
    Bp = _round_up(B, bb)
    if Bp // bb < 2 and B > 8:
        half = _round_up(B, 8) // 2
        bb = _round_up(max(half, 8), 8)
        Bp = _round_up(B, bb)
    return bb, Bp


def modal_smri_forward(x_nchw, params, *, block_b=128):
    """sMRI feature branch of Modal3Classifier.forward -> t, shape (B, FEAT)."""
    B = x_nchw.shape[0]
    bb, Bp = _choose_block_b(B, block_b)

    col = _im2col_nchw(x_nchw)                                        # (B, H*W, KP) bf16
    col = jnp.pad(col, ((0, Bp - B), (0, 0), (0, 0)))                 # pad batch (zeros)
    col2d = col.reshape(Bp * H * W, KP)                               # lane-dense bf16 slab

    wcol, wfc, bfc = pack_params(params)

    out = pl.pallas_call(
        smri_classifier_kernel,
        out_shape=jax.ShapeDtypeStruct((Bp, FEAT), jnp.float32),
        grid_spec=pltpu.PrefetchScalarGridSpec(
            num_scalar_prefetch=0,
            grid=(Bp // bb,),
            in_specs=[
                pl.BlockSpec((bb * H * W, KP), lambda b: (b, 0)),     # im2col slab
                pl.BlockSpec((KP, CP), lambda b: (0, 0)),             # conv weight (+bias row)
                pl.BlockSpec((CP, FEAT), lambda b: (0, 0)),           # fc weight
                pl.BlockSpec((1, FEAT), lambda b: (0, 0)),            # fc bias
            ],
            out_specs=pl.BlockSpec((bb, FEAT), lambda b: (b, 0)),     # lane-dense output
            scratch_shapes=[pltpu.VMEM((bb, CP), jnp.float32)],       # pooled accumulator
        ),
        compiler_params=pltpu.CompilerParams(
            dimension_semantics=("parallel",),
            vmem_limit_bytes=32 * 1024 * 1024,
        ),
    )(col2d, wcol, wfc, bfc)

    return out[:B]


# --------------------------------------------------------------------------------------
# Pure-JAX reference (same bf16 quantization path as the kernel) for a correctness check.
# --------------------------------------------------------------------------------------
def modal_smri_reference(x_nchw, params):
    col = _im2col_nchw(x_nchw).astype(jnp.float32)                    # (B, H*W, KP), bias lane
    wcol, wfc, bfc = pack_params(params)
    acc = jnp.maximum(jnp.einsum("bpk,kc->bpc", col, wcol.astype(jnp.float32)), 0.0)
    pooled = jnp.sum(acc, axis=1).astype(jnp.bfloat16).astype(jnp.float32)
    return pooled @ wfc.astype(jnp.float32) + bfc


def init_params(key):
    k1, k2, k3, k4 = jax.random.split(key, 4)
    return {
        "wconv": 0.05 * jax.random.normal(k1, (KH * KW, CIN, COUT), jnp.float32),
        "bconv": 0.05 * jax.random.normal(k2, (1, COUT), jnp.float32),
        "wfc":   0.05 * jax.random.normal(k3, (COUT, FEAT), jnp.float32),
        "bfc":   0.05 * jax.random.normal(k4, (1, FEAT), jnp.float32),
    }


if __name__ == "__main__":
    key = jax.random.PRNGKey(0)
    k_x, k_p, k_x2 = jax.random.split(key, 3)
    params = init_params(k_p)

    fwd = jax.jit(modal_smri_forward)

    # Small-shape check (B=2): single grid step, single fused chunk.
    B = 2
    x = jax.random.normal(k_x, (B, CIN, H, W), jnp.float32)   # NCHW, like PyTorch
    t = fwd(x, params)
    jax.block_until_ready(t)
    assert t.shape == (B, FEAT) and t.dtype == jnp.float32
    err = float(jnp.max(jnp.abs(t - modal_smri_reference(x, params))))
    assert err < 1e-2, f"max abs error vs reference (B=2): {err}"

    # Larger batch check: exercises the multi-step grid and the fused chunk loop.
    B2 = 40
    x2 = jax.random.normal(k_x2, (B2, CIN, H, W), jnp.float32)
    t2 = fwd(x2, params)
    jax.block_until_ready(t2)
    assert t2.shape == (B2, FEAT) and t2.dtype == jnp.float32
    err2 = float(jnp.max(jnp.abs(t2 - modal_smri_reference(x2, params))))
    assert err2 < 1e-2, f"max abs error vs reference (B=40): {err2}"

    print("KERNEL_OK")
</pallas_src>

<mosaic_0001>
module attributes {stable_mosaic.version = 11 : i64} {
  func.func @smri_classifier_kernel(%arg0: i32, %arg1: memref<2048x64xbf16, #tpu.memory_space<vmem>>, %arg2: memref<64x128xbf16, #tpu.memory_space<vmem>>, %arg3: memref<128x128xbf16, #tpu.memory_space<vmem>>, %arg4: memref<1x128xf32, #tpu.memory_space<vmem>>, %arg5: memref<8x128xf32, #tpu.memory_space<vmem>>, %arg6: memref<8x128xf32, #tpu.memory_space<vmem>>) attributes {dimension_semantics = [#tpu.dimension_semantics<parallel>], iteration_bounds = array<i64: 1>, scalar_prefetch = 0 : i64, scratch_operands = 1 : i64, tpu.core_type = #tpu.core_type<tc>, window_params = [{transform_indices = @transform_0, window_bounds = array<i64: 2048, 64>}, {pipeline_mode = #tpu.pipeline_mode<synchronous>, transform_indices = @transform_1, window_bounds = array<i64: 64, 128>}, {pipeline_mode = #tpu.pipeline_mode<synchronous>, transform_indices = @transform_2, window_bounds = array<i64: 128, 128>}, {pipeline_mode = #tpu.pipeline_mode<synchronous>, transform_indices = @transform_3, window_bounds = array<i64: 1, 128>}, {transform_indices = @transform_4, window_bounds = array<i64: 8, 128>}]} {
    %c0 = arith.constant 0 : index
    %c0_0 = arith.constant 0 : index
    %0 = vector.load %arg2[%c0, %c0_0] : memref<64x128xbf16, #tpu.memory_space<vmem>>, vector<64x128xbf16>
    %c0_1 = arith.constant 0 : index
    %c0_2 = arith.constant 0 : index
    %1 = vector.load %arg1[%c0_1, %c0_2] : memref<2048x64xbf16, #tpu.memory_space<vmem>>, vector<2048x64xbf16>
    %cst = arith.constant dense<0.000000e+00> : vector<2048x128xf32>
    %2 = tpu.matmul %1, %0, %cst {dimension_numbers = #tpu.dot_dimension_numbers<[1], [0], [0], [1], [0, 0, 1, 1], [], []>} : vector<2048x64xbf16>, vector<64x128xbf16>, vector<2048x128xf32> -> vector<2048x128xf32>
    %cst_3 = arith.constant 0.000000e+00 : f32
    %3 = vector.broadcast %cst_3 : f32 to vector<2048x128xf32>
    %4 = arith.maximumf %2, %3 : vector<2048x128xf32>
    %5 = vector.shape_cast %4 : vector<2048x128xf32> to vector<8x256x128xf32>
    %cst_4 = arith.constant dense<0.000000e+00> : vector<8x128xf32>
    %6 = vector.multi_reduction <add>, %5, %cst_4 [1] : vector<8x256x128xf32> to vector<8x128xf32>
    %c0_5 = arith.constant 0 : index
    %c0_6 = arith.constant 0 : index
    %7 = vector.load %arg6[%c0_5, %c0_6] : memref<8x128xf32, #tpu.memory_space<vmem>>, vector<8x128xf32>
    tpu.vector_store %arg6[%c0_5, %c0_6], %6 {strides = array<i32>} : memref<8x128xf32, #tpu.memory_space<vmem>>, vector<8x128xf32>,
    %c0_7 = arith.constant 0 : index
    %c0_8 = arith.constant 0 : index
    %8 = vector.load %arg6[%c0_7, %c0_8] : memref<8x128xf32, #tpu.memory_space<vmem>>, vector<8x128xf32>
    %9 = arith.truncf %8 : vector<8x128xf32> to vector<8x128xbf16>
    %c0_9 = arith.constant 0 : index
    %c0_10 = arith.constant 0 : index
    %10 = vector.load %arg3[%c0_9, %c0_10] : memref<128x128xbf16, #tpu.memory_space<vmem>>, vector<128x128xbf16>
    %cst_11 = arith.constant dense<0.000000e+00> : vector<8x128xf32>
    %11 = tpu.matmul %9, %10, %cst_11 {dimension_numbers = #tpu.dot_dimension_numbers<[1], [0], [0], [1], [0, 0, 1, 1], [], []>} : vector<8x128xbf16>, vector<128x128xbf16>, vector<8x128xf32> -> vector<8x128xf32>
    %c0_12 = arith.constant 0 : index
    %c0_13 = arith.constant 0 : index
    %12 = vector.load %arg4[%c0_12, %c0_13] : memref<1x128xf32, #tpu.memory_space<vmem>>, vector<1x128xf32>
    %13 = vector.broadcast %12 : vector<1x128xf32> to vector<8x128xf32>
    %14 = arith.addf %11, %13 : vector<8x128xf32>
    %c0_14 = arith.constant 0 : index
    %c0_15 = arith.constant 0 : index
    %15 = vector.load %arg5[%c0_14, %c0_15] : memref<8x128xf32, #tpu.memory_space<vmem>>, vector<8x128xf32>
    tpu.vector_store %arg5[%c0_14, %c0_15], %14 {strides = array<i32>} : memref<8x128xf32, #tpu.memory_space<vmem>>, vector<8x128xf32>,
    return
  }
  func.func @transform_0(%arg0: i32) -> (i32, i32) {
    %c0_i32 = arith.constant 0 : i32
    %c0_i32_0 = arith.constant 0 : i32
    return %arg0, %c0_i32 : i32, i32
  }
  func.func @transform_1(%arg0: i32) -> (i32, i32) {
    %c0_i32 = arith.constant 0 : i32
    %c0_i32_0 = arith.constant 0 : i32
    %c0_i32_1 = arith.constant 0 : i32
    return %c0_i32, %c0_i32_0 : i32, i32
  }
  func.func @transform_2(%arg0: i32) -> (i32, i32) {
    %c0_i32 = arith.constant 0 : i32
    %c0_i32_0 = arith.constant 0 : i32
    %c0_i32_1 = arith.constant 0 : i32
    return %c0_i32, %c0_i32_0 : i32, i32
  }
  func.func @transform_3(%arg0: i32) -> (i32, i32) {
    %c0_i32 = arith.constant 0 : i32
    %c0_i32_0 = arith.constant 0 : i32
    %c0_i32_1 = arith.constant 0 : i32
    return %c0_i32, %c0_i32_0 : i32, i32
  }
  func.func @transform_4(%arg0: i32) -> (i32, i32) {
    %c0_i32 = arith.constant 0 : i32
    %c0_i32_0 = arith.constant 0 : i32
    return %arg0, %c0_i32 : i32, i32
  }
}

</mosaic_0001>

<bundles_post_ra>
// kernel: modal_smri_forward.1
= control target key start
LH: loop header
LB: loop body
LE: loop exit
PB: predicated region body
PF: predicated region fallthrough
CT: control target
= control target key end

     0   :  { %vm946_vm0 = vcmask 523264   ;;  %vm2948_vm1 = vcmask 1041409   ;;  %vm3927_vm2 = vmmov 0   ;;  %vm2950_vm3 = vcmask 1042434   ;;  %s4625_s1 = inlined_call_operand.vmem [shape: bf16[64,128], index: 1, kind: input, shape index: {}]   ;;  %s4626_s0 = inlined_call_operand.vmem [shape: bf16[2048,64], index: 0, kind: input, shape index: {}]   ;;  %s4627_s2 = inlined_call_operand.vmem [shape: bf16[128,128], index: 2, kind: input, shape index: {}]   ;;  %s4628_s3 = inlined_call_operand.vmem [shape: f32[1,128], index: 3, kind: input, shape index: {}]   ;;  %s4629_s4 = inlined_call_operand.vmem [shape: f32[8,128], index: 4, kind: output, shape index: {}]  }
   0x1   :  { %v3786_v0 = vld [vmem:[%s4625_s1] sm:$0xff]   ;;  %v3787_v1 = vld [vmem:[%s4625_s1 + $0x8] sm:$0xff]   ;;  %v3788_v2 = vld [vmem:[%s4625_s1 + $0x10] sm:$0xff]   ;;  %vm2952_vm4 = vcmask 1043459   ;;  %vm2954_vm5 = vcmask 1044484   ;;  %vm2956_vm6 = vcmask 1045509  }
   0x2   :  { %3492 = vmatprep.subr.bf16.mxu0 %v3786_v0  ;;  %3776 = vmatprep.subr.bf16.mxu1 %v3786_v0  ;;  %v3790_v3 = vld [vmem:[%s4626_s0] sm:$0xff]   ;;  %v3789_v4 = vld [vmem:[%s4625_s1 + $0x18] sm:$0xff]   ;;  %v3791_v5 = vld [vmem:[%s4626_s0 + $0x8] sm:$0xff]   ;;  %vm2958_vm7 = vcmask 1046534   ;;  %vm2960_vm8 = vcmask 1047559  }
   0x3   :  { %3493 = vmatpush3.bf16.msra.mxu0 %v3786_v0  ;;  %3780 = vmatpush3.bf16.msra.mxu1 %v3786_v0  ;;  %v3792_v6 = vld [vmem:[%s4626_s0 + $0x10] sm:$0xff]   ;;  %v3807_v8 = vld [vmem:[%s4626_s0 + $0x218] sm:$0xff]   ;;  %v3794_v10 = vld [vmem:[%s4626_s0 + $0x20] sm:$0xff]  }
   0x4   :  { %3494 = vmatprep.subr.bf16.mxu0 %v3787_v1  ;;  %3777 = vmatprep.subr.bf16.mxu1 %v3787_v1  ;;  %v3806_v7 = vld [vmem:[%s4626_s0 + $0x210] sm:$0xff]   ;;  %v3793_v9 = vld [vmem:[%s4626_s0 + $0x18] sm:$0xff]   ;;  %v3810_v11 = vld [vmem:[%s4626_s0 + $0x220] sm:$0xff]  }
   0x5   :  { %3500 = vmatprep.mubr.msk.bf16.mxu0 %vm946_vm0, %v3790_v3  ;;  %3632 = vmatprep.mubr.msk.bf16.mxu1 %vm946_vm0, %v3806_v7  ;;  %v3811_v12 = vld [vmem:[%s4626_s0 + $0x228] sm:$0xff]   ;;  %v3814_v13 = vld [vmem:[%s4626_s0 + $0x230] sm:$0xff]   ;;  %v3815_v16 = vld [vmem:[%s4626_s0 + $0x238] sm:$0xff]  }
   0x6   :  { %v3795_v14 = vld [vmem:[%s4626_s0 + $0x28] sm:$0xff]   ;;  %v3796_v15 = vld [vmem:[%s4626_s0 + $0x30] sm:$0xff]   ;;  %v3818_v17 = vld [vmem:[%s4626_s0 + $0x240] sm:$0xff]  }
   0x7   :  { %3495 = vmatpush3.bf16.msra.mxu0 %v3787_v1  ;;  %3781 = vmatpush3.bf16.msra.mxu1 %v3787_v1  ;;  %v3797_v18 = vld [vmem:[%s4626_s0 + $0x38] sm:$0xff]   ;;  %v3798_v19 = vld [vmem:[%s4626_s0 + $0x40] sm:$0xff]   ;;  %v3819_v20 = vld [vmem:[%s4626_s0 + $0x248] sm:$0xff]  }
   0x8   :  { %3496 = vmatprep.subr.bf16.mxu0 %v3788_v2  ;;  %3778 = vmatprep.subr.bf16.mxu1 %v3788_v2  ;;  %v3822_v21 = vld [vmem:[%s4626_s0 + $0x250] sm:$0xff]   ;;  %v3799_v22 = vld [vmem:[%s4626_s0 + $0x48] sm:$0xff]   ;;  %v3823_v24 = vld [vmem:[%s4626_s0 + $0x258] sm:$0xff]  }
   0x9   :  { %v3800_v23 = vld [vmem:[%s4626_s0 + $0x50] sm:$0xff]   ;;  %v3826_v25 = vld [vmem:[%s4626_s0 + $0x260] sm:$0xff]   ;;  %v3801_v26 = vld [vmem:[%s4626_s0 + $0x58] sm:$0xff]  }
   0xa   :  { %v3802_v27 = vld [vmem:[%s4626_s0 + $0x60] sm:$0xff]   ;;  %v3827_v28 = vld [vmem:[%s4626_s0 + $0x268] sm:$0xff]   ;;  %v3830_v29 = vld [vmem:[%s4626_s0 + $0x270] sm:$0xff]  }
   0xb   :  { %3497 = vmatpush3.bf16.msra.mxu0 %v3788_v2  ;;  %3782 = vmatpush3.bf16.msra.mxu1 %v3788_v2  ;;  %v3803_v30 = vld [vmem:[%s4626_s0 + $0x68] sm:$0xff]   ;;  %v3804_v31 = vld [vmem:[%s4626_s0 + $0x70] sm:$0xff]   ;;  %v3831_v32 = vld [vmem:[%s4626_s0 + $0x278] sm:$0xff]  }
   0xc   :  { %3498 = vmatprep.subr.bf16.mxu0 %v3789_v4  ;;  %3779 = vmatprep.subr.bf16.mxu1 %v3789_v4  ;;  %v3834_v33 = vld [vmem:[%s4626_s0 + $0x280] sm:$0xff]   ;;  %v3805_v34 = vld [vmem:[%s4626_s0 + $0x78] sm:$0xff]   ;;  %v3835_v36 = vld [vmem:[%s4626_s0 + $0x288] sm:$0xff]  }
   0xd   :  { %v3808_v35 = vld [vmem:[%s4626_s0 + $0x80] sm:$0xff]   ;;  %v3838_v37 = vld [vmem:[%s4626_s0 + $0x290] sm:$0xff]   ;;  %v3809_v38 = vld [vmem:[%s4626_s0 + $0x88] sm:$0xff]  }
   0xe   :  { %v3812_v39 = vld [vmem:[%s4626_s0 + $0x90] sm:$0xff]   ;;  %v3839_v40 = vld [vmem:[%s4626_s0 + $0x298] sm:$0xff]   ;;  %v3842_v41 = vld [vmem:[%s4626_s0 + $0x2a0] sm:$0xff]  }
   0xf   :  { %3499 = vmatpush3.bf16.msra.mxu0 %v3789_v4  ;;  %3783 = vmatpush3.bf16.msra.mxu1 %v3789_v4  ;;  %v3813_v42 = vld [vmem:[%s4626_s0 + $0x98] sm:$0xff]   ;;  %v3816_v43 = vld [vmem:[%s4626_s0 + $0xa0] sm:$0xff]   ;;  %v3843_v44 = vld [vmem:[%s4626_s0 + $0x2a8] sm:$0xff]  }
  0x10   :  { %v3846_v45 = vld [vmem:[%s4626_s0 + $0x2b0] sm:$0xff]   ;;  %v3817_v46 = vld [vmem:[%s4626_s0 + $0xa8] sm:$0xff]   ;;  %v3847_v48 = vld [vmem:[%s4626_s0 + $0x2b8] sm:$0xff]  }
  0x11   :  { %v3820_v47 = vld [vmem:[%s4626_s0 + $0xb0] sm:$0xff]   ;;  %v3850_v49 = vld [vmem:[%s4626_s0 + $0x2c0] sm:$0xff]   ;;  %v3821_v50 = vld [vmem:[%s4626_s0 + $0xb8] sm:$0xff]  }
  0x12   :  { %3501 = vmatmul.mubr.msk.bf16.vlgmr.msra.gmra.mrb[0].mxu0 %vm946_vm0, %v3791_v5  ;;  %3633 = vmatmul.mubr.msk.bf16.vlgmr.msra.gmra.mrb[0].mxu1 %vm946_vm0, %v3807_v8  ;;  %v3824_v51 = vld [vmem:[%s4626_s0 + $0xc0] sm:$0xff]   ;;  %v3851_v52 = vld [vmem:[%s4626_s0 + $0x2c8] sm:$0xff]   ;;  %v3854_v53 = vld [vmem:[%s4626_s0 + $0x2d0] sm:$0xff]  }
  0x13   :  { %3504 = vmatprep.mubr.msk.bf16.mxu0 %vm946_vm0, %v3792_v6  ;;  %3636 = vmatprep.mubr.msk.bf16.mxu1 %vm946_vm0, %v3810_v11  ;;  %v3825_v54 = vld [vmem:[%s4626_s0 + $0xc8] sm:$0xff]   ;;  %v3828_v55 = vld [vmem:[%s4626_s0 + $0xd0] sm:$0xff]   ;;  %v3855_v56 = vld [vmem:[%s4626_s0 + $0x2d8] sm:$0xff]  }
  0x14   :  { %v3858_v57 = vld [vmem:[%s4626_s0 + $0x2e0] sm:$0xff]   ;;  %v3829_v58 = vld [vmem:[%s4626_s0 + $0xd8] sm:$0xff]   ;;  %v3859_v60 = vld [vmem:[%s4626_s0 + $0x2e8] sm:$0xff]  }
  0x15   :  { %v3832_v59 = vld [vmem:[%s4626_s0 + $0xe0] sm:$0xff]   ;;  %v3862_v61 = vld [vmem:[%s4626_s0 + $0x2f0] sm:$0xff]   ;;  %v3833_v62 = vld [vmem:[%s4626_s0 + $0xe8] sm:$0xff]  }
  0x16   :  { %v3836_v63 = vld [vmem:[%s4626_s0 + $0xf0] sm:$0xff]   ;;  %v3863_v0 = vld [vmem:[%s4626_s0 + $0x2f8] sm:$0xff]   ;;  %v3866_v1 = vld [vmem:[%s4626_s0 + $0x300] sm:$0xff]  }
  0x17   :  { %v3837_v2 = vld [vmem:[%s4626_s0 + $0xf8] sm:$0xff]   ;;  %v3840_v3 = vld [vmem:[%s4626_s0 + $0x100] sm:$0xff]   ;;  %v3867_v4 = vld [vmem:[%s4626_s0 + $0x308] sm:$0xff]  }
  0x18   :  { %v3870_v5 = vld [vmem:[%s4626_s0 + $0x310] sm:$0xff]   ;;  %v3841_v6 = vld [vmem:[%s4626_s0 + $0x108] sm:$0xff]   ;;  %v3871_v8 = vld [vmem:[%s4626_s0 + $0x318] sm:$0xff]  }
  0x19   :  { %v3844_v7 = vld [vmem:[%s4626_s0 + $0x110] sm:$0xff]   ;;  %v3848_v11 = vld [vmem:[%s4626_s0 + $0x120] sm:$0xff]  }
  0x1a   :  { %3505 = vmatmul.mubr.msk.bf16.gmra.mrb[4].mxu0 %vm946_vm0, %v3793_v9  ;;  %3637 = vmatmul.mubr.msk.bf16.gmra.mrb[4].mxu1 %vm946_vm0, %v3811_v12  ;;  %v3874_v9 = vld [vmem:[%s4626_s0 + $0x320] sm:$0xff]   ;;  %v3875_v12 = vld [vmem:[%s4626_s0 + $0x328] sm:$0xff]  }
  0x1b   :  { %3508 = vmatprep.mubr.msk.bf16.mxu0 %vm946_vm0, %v3794_v10  ;;  %3640 = vmatprep.mubr.msk.bf16.mxu1 %vm946_vm0, %v3814_v13  ;;  %v3845_v10 = vld [vmem:[%s4626_s0 + $0x118] sm:$0xff]   ;;  %v3878_v13 = vld [vmem:[%s4626_s0 + $0x330] sm:$0xff]  }
  0x22   :  { %3509 = vmatmul.mubr.msk.bf16.gmra.mrb[8].mxu0 %vm946_vm0, %v3795_v14  ;;  %3641 = vmatmul.mubr.msk.bf16.gmra.mrb[8].mxu1 %vm946_vm0, %v3815_v16  ;;  %v3849_v14 = vld [vmem:[%s4626_s0 + $0x128] sm:$0xff]   ;;  %v3879_v16 = vld [vmem:[%s4626_s0 + $0x338] sm:$0xff]  }
  0x23   :  { %3512 = vmatprep.mubr.msk.bf16.mxu0 %vm946_vm0, %v3796_v15  ;;  %3644 = vmatprep.mubr.msk.bf16.mxu1 %vm946_vm0, %v3818_v17  ;;  %v3852_v15 = vld [vmem:[%s4626_s0 + $0x130] sm:$0xff]   ;;  %v3882_v17 = vld [vmem:[%s4626_s0 + $0x340] sm:$0xff]  }
  0x2a   :  { %3513 = vmatmul.mubr.msk.bf16.gmra.mrb[12].mxu0 %vm946_vm0, %v3797_v18  ;;  %3645 = vmatmul.mubr.msk.bf16.gmra.mrb[12].mxu1 %vm946_vm0, %v3819_v20  ;;  %v3853_v18 = vld [vmem:[%s4626_s0 + $0x138] sm:$0xff]   ;;  %v3883_v20 = vld [vmem:[%s4626_s0 + $0x348] sm:$0xff]  }
  0x2b   :  { %3516 = vmatprep.mubr.msk.bf16.mxu0 %vm946_vm0, %v3798_v19  ;;  %3648 = vmatprep.mubr.msk.bf16.mxu1 %vm946_vm0, %v3822_v21  ;;  %v3856_v19 = vld [vmem:[%s4626_s0 + $0x140] sm:$0xff]   ;;  %v3886_v21 = vld [vmem:[%s4626_s0 + $0x350] sm:$0xff]  }
  0x32   :  { %3517 = vmatmul.mubr.msk.bf16.gmra.mrb[16].mxu0 %vm946_vm0, %v3799_v22  ;;  %3649 = vmatmul.mubr.msk.bf16.gmra.mrb[16].mxu1 %vm946_vm0, %v3823_v24  ;;  %v3857_v22 = vld [vmem:[%s4626_s0 + $0x148] sm:$0xff]   ;;  %v3887_v24 = vld [vmem:[%s4626_s0 + $0x358] sm:$0xff]  }
  0x33   :  { %3520 = vmatprep.mubr.msk.bf16.mxu0 %vm946_vm0, %v3800_v23  ;;  %3652 = vmatprep.mubr.msk.bf16.mxu1 %vm946_vm0, %v3826_v25  ;;  %v3860_v23 = vld [vmem:[%s4626_s0 + $0x150] sm:$0xff]   ;;  %v3890_v25 = vld [vmem:[%s4626_s0 + $0x360] sm:$0xff]  }
  0x3a   :  { %3521 = vmatmul.mubr.msk.bf16.gmra.mrb[20].mxu0 %vm946_vm0, %v3801_v26  ;;  %3653 = vmatmul.mubr.msk.bf16.gmra.mrb[20].mxu1 %vm946_vm0, %v3827_v28  ;;  %v3861_v26 = vld [vmem:[%s4626_s0 + $0x158] sm:$0xff]   ;;  %v3891_v28 = vld [vmem:[%s4626_s0 + $0x368] sm:$0xff]  }
  0x3b   :  { %3524 = vmatprep.mubr.msk.bf16.mxu0 %vm946_vm0, %v3802_v27  ;;  %3656 = vmatprep.mubr.msk.bf16.mxu1 %vm946_vm0, %v3830_v29  ;;  %v3864_v27 = vld [vmem:[%s4626_s0 + $0x160] sm:$0xff]   ;;  %v3894_v29 = vld [vmem:[%s4626_s0 + $0x370] sm:$0xff]  }
  0x42   :  { %3525 = vmatmul.mubr.msk.bf16.gmra.mrb[24].mxu0 %vm946_vm0, %v3803_v30  ;;  %3657 = vmatmul.mubr.msk.bf16.gmra.mrb[24].mxu1 %vm946_vm0, %v3831_v32  ;;  %v3865_v30 = vld [vmem:[%s4626_s0 + $0x168] sm:$0xff]   ;;  %v3895_v32 = vld [vmem:[%s4626_s0 + $0x378] sm:$0xff]  }
  0x43   :  { %3528 = vmatprep.mubr.msk.bf16.mxu0 %vm946_vm0, %v3804_v31  ;;  %3660 = vmatprep.mubr.msk.bf16.mxu1 %vm946_vm0, %v3834_v33  ;;  %v3868_v31 = vld [vmem:[%s4626_s0 + $0x170] sm:$0xff]   ;;  %v3898_v33 = vld [vmem:[%s4626_s0 + $0x380] sm:$0xff]  }
  0x4a   :  { %3529 = vmatmul.mubr.msk.bf16.gmra.mrb[28].mxu0 %vm946_vm0, %v3805_v34  ;;  %3661 = vmatmul.mubr.msk.bf16.gmra.mrb[28].mxu1 %vm946_vm0, %v3835_v36  ;;  %v3869_v34 = vld [vmem:[%s4626_s0 + $0x178] sm:$0xff]   ;;  %v3926_v36 = vmov 0.0  }
  0x4b   :  { %3532 = vmatprep.mubr.msk.bf16.mxu0 %vm946_vm0, %v3808_v35  ;;  %3664 = vmatprep.mubr.msk.bf16.mxu1 %vm946_vm0, %v3838_v37  ;;  %v3872_v35 = vld [vmem:[%s4626_s0 + $0x180] sm:$0xff]  }
  0x4c   :  { %3756 = vmatprep.subr.bf16.mxu1 %v3926_v36  ;;  %v3918_v37 = vld [vmem:[%s4627_s2] sm:$0xff]  }
  0x4d   :  { %3757 = vmatpush3.bf16.msra.mxu1 %v3918_v37 }
  0x4e   :  { %3758 = vmatprep.subr.bf16.mxu1 %v3926_v36 }
  0x52   :  { %3533 = vmatmul.mubr.msk.bf16.gmra.mrb[32].mxu0 %vm946_vm0, %v3809_v38  ;;  %3665 = vmatmul.mubr.msk.bf16.gmra.mrb[32].mxu1 %vm946_vm0, %v3839_v40  ;;  %v3899_v38 = vld [vmem:[%s4626_s0 + $0x388] sm:$0xff]  }
  0x53   :  { %3536 = vmatprep.mubr.msk.bf16.mxu0 %vm946_vm0, %v3812_v39  ;;  %3668 = vmatprep.mubr.msk.bf16.mxu1 %vm946_vm0, %v3842_v41  ;;  %v3902_v39 = vld [vmem:[%s4626_s0 + $0x390] sm:$0xff]   ;;  %v3873_v40 = vld [vmem:[%s4626_s0 + $0x188] sm:$0xff]  }
  0x54   :  { %v3876_v41 = vld [vmem:[%s4626_s0 + $0x190] sm:$0xff]  }
  0x5a   :  { %3537 = vmatmul.mubr.msk.bf16.gmra.mrb[36].mxu0 %vm946_vm0, %v3813_v42  ;;  %3669 = vmatmul.mubr.msk.bf16.gmra.mrb[36].mxu1 %vm946_vm0, %v3843_v44  ;;  %v3903_v42 = vld [vmem:[%s4626_s0 + $0x398] sm:$0xff]  }
  0x5b   :  { %3540 = vmatprep.mubr.msk.bf16.mxu0 %vm946_vm0, %v3816_v43  ;;  %3672 = vmatprep.mubr.msk.bf16.mxu1 %vm946_vm0, %v3846_v45  ;;  %v3906_v43 = vld [vmem:[%s4626_s0 + $0x3a0] sm:$0xff]   ;;  %v3877_v44 = vld [vmem:[%s4626_s0 + $0x198] sm:$0xff]  }
  0x5c   :  { %v3880_v45 = vld [vmem:[%s4626_s0 + $0x1a0] sm:$0xff]  }
  0x62   :  { %3541 = vmatmul.mubr.msk.bf16.gmra.mrb[40].mxu0 %vm946_vm0, %v3817_v46  ;;  %3673 = vmatmul.mubr.msk.bf16.gmra.mrb[40].mxu1 %vm946_vm0, %v3847_v48  ;;  %v3907_v46 = vld [vmem:[%s4626_s0 + $0x3a8] sm:$0xff]  }
  0x63   :  { %3544 = vmatprep.mubr.msk.bf16.mxu0 %vm946_vm0, %v3820_v47  ;;  %3676 = vmatprep.mubr.msk.bf16.mxu1 %vm946_vm0, %v3850_v49  ;;  %v3908_v47 = vld [vmem:[%s4626_s0 + $0x3b0] sm:$0xff]   ;;  %v3881_v48 = vld [vmem:[%s4626_s0 + $0x1a8] sm:$0xff]  }
  0x64   :  { %v3884_v49 = vld [vmem:[%s4626_s0 + $0x1b0] sm:$0xff]  }
  0x6a   :  { %3545 = vmatmul.mubr.msk.bf16.gmra.mrb[44].mxu0 %vm946_vm0, %v3821_v50  ;;  %3677 = vmatmul.mubr.msk.bf16.gmra.mrb[44].mxu1 %vm946_vm0, %v3851_v52  ;;  %v3909_v50 = vld [vmem:[%s4626_s0 + $0x3b8] sm:$0xff]  }
  0x6b   :  { %3548 = vmatprep.mubr.msk.bf16.mxu0 %vm946_vm0, %v3824_v51  ;;  %3680 = vmatprep.mubr.msk.bf16.mxu1 %vm946_vm0, %v3854_v53  ;;  %v3910_v51 = vld [vmem:[%s4626_s0 + $0x3c0] sm:$0xff]  }
  0x72   :  { %3549 = vmatmul.mubr.msk.bf16.gmra.mrb[48].mxu0 %vm946_vm0, %v3825_v54  ;;  %3681 = vmatmul.mubr.msk.bf16.gmra.mrb[48].mxu1 %vm946_vm0, %v3855_v56  ;;  %v3885_v54 = vld [vmem:[%s4626_s0 + $0x1b8] sm:$0xff]   ;;  %v3888_v56 = vld [vmem:[%s4626_s0 + $0x1c0] sm:$0xff]  }
  0x73   :  { %3552 = vmatprep.mubr.msk.bf16.mxu0 %vm946_vm0, %v3828_v55  ;;  %3684 = vmatprep.mubr.msk.bf16.mxu1 %vm946_vm0, %v3858_v57 }
  0x7a   :  { %3553 = vmatmul.mubr.msk.bf16.gmra.mrb[52].mxu0 %vm946_vm0, %v3829_v58  ;;  %3685 = vmatmul.mubr.msk.bf16.gmra.mrb[52].mxu1 %vm946_vm0, %v3859_v60 }
  0x7b   :  { %3556 = vmatprep.mubr.msk.bf16.mxu0 %vm946_vm0, %v3832_v59  ;;  %3688 = vmatprep.mubr.msk.bf16.mxu1 %vm946_vm0, %v3862_v61 }
  0x82   :  { %3557 = vmatmul.mubr.msk.bf16.gmra.mrb[56].mxu0 %vm946_vm0, %v3833_v62  ;;  %3689 = vmatmul.mubr.msk.bf16.gmra.mrb[56].mxu1 %vm946_vm0, %v3863_v0 }
  0x83   :  { %3560 = vmatprep.mubr.msk.bf16.mxu0 %vm946_vm0, %v3836_v63  ;;  %3692 = vmatprep.mubr.msk.bf16.mxu1 %vm946_vm0, %v3866_v1  ;;  %v3911_v63 = vld [vmem:[%s4626_s0 + $0x3c8] sm:$0xff]  }
  0x8a   :  { %3561 = vmatmul.mubr.msk.bf16.gmra.mrb[60].mxu0 %vm946_vm0, %v3837_v2  ;;  %3693 = vmatmul.mubr.msk.bf16.gmra.mrb[60].mxu1 %vm946_vm0, %v3867_v4  ;;  %v3912_v2 = vld [vmem:[%s4626_s0 + $0x3d0] sm:$0xff]  }
  0x8b   :  { %3564 = vmatprep.mubr.msk.bf16.mxu0 %vm946_vm0, %v3840_v3  ;;  %3696 = vmatprep.mubr.msk.bf16.mxu1 %vm946_vm0, %v3870_v5 }
  0x92   :  { %3565 = vmatmul.mubr.msk.bf16.gmra.mrb[64].mxu0 %vm946_vm0, %v3841_v6  ;;  %3697 = vmatmul.mubr.msk.bf16.gmra.mrb[64].mxu1 %vm946_vm0, %v3871_v8  ;;  %v3889_v8 = vld [vmem:[%s4626_s0 + $0x1c8] sm:$0xff]  }
  0x93   :  { %3568 = vmatprep.mubr.msk.bf16.mxu0 %vm946_vm0, %v3844_v7  ;;  %3700 = vmatprep.mubr.msk.bf16.mxu1 %vm946_vm0, %v3874_v9 }
  0x9a   :  { %3569 = vmatmul.mubr.msk.bf16.gmra.mrb[68].mxu0 %vm946_vm0, %v3845_v10  ;;  %3701 = vmatmul.mubr.msk.bf16.gmra.mrb[68].mxu1 %vm946_vm0, %v3875_v12  ;;  %v3892_v12 = vld [vmem:[%s4626_s0 + $0x1d0] sm:$0xff]  }
  0x9b   :  { %3572 = vmatprep.mubr.msk.bf16.mxu0 %vm946_vm0, %v3848_v11  ;;  %3704 = vmatprep.mubr.msk.bf16.mxu1 %vm946_vm0, %v3878_v13 }
  0xa2   :  { %3573 = vmatmul.mubr.msk.bf16.gmra.mrb[72].mxu0 %vm946_vm0, %v3849_v14  ;;  %3705 = vmatmul.mubr.msk.bf16.gmra.mrb[72].mxu1 %vm946_vm0, %v3879_v16 }
  0xa3   :  { %3576 = vmatprep.mubr.msk.bf16.mxu0 %vm946_vm0, %v3852_v15  ;;  %3708 = vmatprep.mubr.msk.bf16.mxu1 %vm946_vm0, %v3882_v17 }
  0xaa   :  { %3577 = vmatmul.mubr.msk.bf16.gmra.mrb[76].mxu0 %vm946_vm0, %v3853_v18  ;;  %3709 = vmatmul.mubr.msk.bf16.gmra.mrb[76].mxu1 %vm946_vm0, %v3883_v20 }
  0xab   :  { %3580 = vmatprep.mubr.msk.bf16.mxu0 %vm946_vm0, %v3856_v19  ;;  %3712 = vmatprep.mubr.msk.bf16.mxu1 %vm946_vm0, %v3886_v21  ;;  %v3913_v19 = vld [vmem:[%s4626_s0 + $0x3d8] sm:$0xff]  }
  0xb2   :  { %3581 = vmatmul.mubr.msk.bf16.gmra.mrb[80].mxu0 %vm946_vm0, %v3857_v22  ;;  %3713 = vmatmul.mubr.msk.bf16.gmra.mrb[80].mxu1 %vm946_vm0, %v3887_v24  ;;  %v3914_v22 = vld [vmem:[%s4626_s0 + $0x3e0] sm:$0xff]  }
  0xb3   :  { %3584 = vmatprep.mubr.msk.bf16.mxu0 %vm946_vm0, %v3860_v23  ;;  %3716 = vmatprep.mubr.msk.bf16.mxu1 %vm946_vm0, %v3890_v25 }
  0xba   :  { %3585 = vmatmul.mubr.msk.bf16.gmra.mrb[84].mxu0 %vm946_vm0, %v3861_v26  ;;  %3717 = vmatmul.mubr.msk.bf16.gmra.mrb[84].mxu1 %vm946_vm0, %v3891_v28 }
  0xbb   :  { %3588 = vmatprep.mubr.msk.bf16.mxu0 %vm946_vm0, %v3864_v27  ;;  %3720 = vmatprep.mubr.msk.bf16.mxu1 %vm946_vm0, %v3894_v29  ;;  %v3919_v27 = vld [vmem:[%s4627_s2 + $0x8] sm:$0xff]   ;;  %v3893_v29 = vld [vmem:[%s4626_s0 + $0x1d8] sm:$0xff]  }
  0xbc   :  { %3759 = vmatpush3.bf16.msra.mxu1 %v3919_v27 }
  0xbd   :  { %3760 = vmatprep.subr.bf16.mxu1 %v3926_v36 }
  0xc2   :  { %3589 = vmatmul.mubr.msk.bf16.gmra.mrb[88].mxu0 %vm946_vm0, %v3865_v30  ;;  %3721 = vmatmul.mubr.msk.bf16.gmra.mrb[88].mxu1 %vm946_vm0, %v3895_v32 }
  0xc3   :  { %3592 = vmatprep.mubr.msk.bf16.mxu0 %vm946_vm0, %v3868_v31  ;;  %3724 = vmatprep.mubr.msk.bf16.mxu1 %vm946_vm0, %v3898_v33  ;;  %v3896_v33 = vld [vmem:[%s4626_s0 + $0x1e0] sm:$0xff]  }
  0xca   :  { %3593 = vmatmul.mubr.msk.bf16.gmra.mrb[92].mxu0 %vm946_vm0, %v3869_v34  ;;  %3725 = vmatmul.mubr.msk.bf16.gmra.mrb[92].mxu1 %vm946_vm0, %v3899_v38 }
  0xcb   :  { %3596 = vmatprep.mubr.msk.bf16.mxu0 %vm946_vm0, %v3872_v35  ;;  %3728 = vmatprep.mubr.msk.bf16.mxu1 %vm946_vm0, %v3902_v39 }
  0xd2   :  { %3597 = vmatmul.mubr.msk.bf16.gmra.mrb[96].mxu0 %vm946_vm0, %v3873_v40  ;;  %3729 = vmatmul.mubr.msk.bf16.gmra.mrb[96].mxu1 %vm946_vm0, %v3903_v42 }
  0xd3   :  { %3600 = vmatprep.mubr.msk.bf16.mxu0 %vm946_vm0, %v3876_v41  ;;  %3732 = vmatprep.mubr.msk.bf16.mxu1 %vm946_vm0, %v3906_v43  ;;  %v3915_v41 = vld [vmem:[%s4626_s0 + $0x3e8] sm:$0xff]  }
  0xda   :  { %3601 = vmatmul.mubr.msk.bf16.gmra.mrb[100].mxu0 %vm946_vm0, %v3877_v44  ;;  %3733 = vmatmul.mubr.msk.bf16.gmra.mrb[100].mxu1 %vm946_vm0, %v3907_v46  ;;  %v3916_v44 = vld [vmem:[%s4626_s0 + $0x3f0] sm:$0xff]  }
  0xdb   :  { %3604 = vmatprep.mubr.msk.bf16.mxu0 %vm946_vm0, %v3880_v45  ;;  %3736 = vmatprep.mubr.msk.bf16.mxu1 %vm946_vm0, %v3908_v47 }
  0xe2   :  { %3605 = vmatmul.mubr.msk.bf16.gmra.mrb[104].mxu0 %vm946_vm0, %v3881_v48  ;;  %3737 = vmatmul.mubr.msk.bf16.gmra.mrb[104].mxu1 %vm946_vm0, %v3909_v50  ;;  %v3897_v50 = vld [vmem:[%s4626_s0 + $0x1e8] sm:$0xff]  }
  0xe3   :  { %3608 = vmatprep.mubr.msk.bf16.mxu0 %vm946_vm0, %v3884_v49  ;;  %3740 = vmatprep.mubr.msk.bf16.mxu1 %vm946_vm0, %v3910_v51 }
  0xe5   :  { %v3502_v52 = vpop.f32.mrb[0].mxu0  ;;  %v4417_v60 = vpop.f32.mrb[0].mxu1 }
  0xe6   :  { %v1365_v53 = vpop.f32.mrb[1].mxu0  ;;  %v2390_v61 = vmax.f32 %v3502_v52, 0.0  ;;  %v4423_v0 = vpop.f32.mrb[1].mxu1 }
  0xe7   :  { %v3503_v55 = vpop.f32.mrb[2].mxu0  ;;  %v2388_v58 = vmax.f32 %v1365_v53, 0.0  ;;  %v4425_v1 = vpop.f32.mrb[2].mxu1 }
  0xe8   :  { %v1368_v57 = vpop.f32.mrb[3].mxu0  ;;  %v2391_v3 = vmax.f32 %v3503_v55, 0.0  ;;  %v4430_v6 = vpop.f32.mrb[3].mxu1 }
  0xe9   :  { %v2389_v59 = vmax.f32 %v1368_v57, 0.0 }
  0xea   :  { %3609 = vmatmul.mubr.msk.bf16.gmra.mrb[108].mxu0 %vm946_vm0, %v3885_v54  ;;  %3741 = vmatmul.mubr.msk.bf16.gmra.mrb[108].mxu1 %vm946_vm0, %v3911_v63  ;;  %v3900_v54 = vld [vmem:[%s4626_s0 + $0x1f0] sm:$0xff]  }
  0xeb   :  { %v2644_v62 = vadd.f32 %v2389_v59, %v2388_v58  ;;  %3612 = vmatprep.mubr.msk.bf16.mxu0 %vm946_vm0, %v3888_v56  ;;  %3744 = vmatprep.mubr.msk.bf16.mxu1 %vm946_vm0, %v3912_v2 }
  0xed   :  { %v2645_v4 = vadd.f32 %v2644_v62, %v2390_v61  ;;  %v3506_v5 = vpop.f32.mrb[4].mxu0  ;;  %v4441_v16 = vpop.f32.mrb[4].mxu1  ;;  %v3917_v62 = vld [vmem:[%s4626_s0 + $0x3f8] sm:$0xff]  }
  0xee   :  { %v1381_v7 = vpop.f32.mrb[5].mxu0  ;;  %v2394_v17 = vmax.f32 %v3506_v5, 0.0  ;;  %v4447_v20 = vpop.f32.mrb[5].mxu1 }
  0xef   :  { %v2392_v9 = vmax.f32 %v1381_v7, 0.0  ;;  %v2646_v10 = vadd.f32 %v2645_v4, %v2391_v3  ;;  %v3507_v11 = vpop.f32.mrb[6].mxu0  ;;  %v4449_v21 = vpop.f32.mrb[6].mxu1 }
  0xf0   :  { %v1384_v13 = vpop.f32.mrb[7].mxu0  ;;  %v2395_v23 = vmax.f32 %v3507_v11, 0.0  ;;  %v4454_v26 = vpop.f32.mrb[7].mxu1 }
  0xf1   :  { %v2647_v14 = vadd.f32 %v2646_v10, %v2392_v9  ;;  %v2393_v15 = vmax.f32 %v1384_v13, 0.0  ;;  %v3901_v10 = vld [vmem:[%s4626_s0 + $0x1f8] sm:$0xff]  }
  0xf2   :  { %3613 = vmatmul.mubr.msk.bf16.gmra.mrb[112].mxu0 %vm946_vm0, %v3889_v8  ;;  %3745 = vmatmul.mubr.msk.bf16.gmra.mrb[112].mxu1 %vm946_vm0, %v3913_v19  ;;  %v3920_v8 = vld [vmem:[%s4627_s2 + $0x10] sm:$0xff]  }
  0xf3   :  { %v2648_v18 = vadd.f32 %v2647_v14, %v2393_v15  ;;  %3616 = vmatprep.mubr.msk.bf16.mxu0 %vm946_vm0, %v3892_v12  ;;  %3748 = vmatprep.mubr.msk.bf16.mxu1 %vm946_vm0, %v3914_v22  ;;  %v3904_v14 = vld [vmem:[%s4626_s0 + $0x200] sm:$0xff]  }
  0xf4   :  { %3761 = vmatpush3.bf16.msra.mxu1 %v3920_v8 }
  0xf5   :  { %v2649_v24 = vadd.f32 %v2648_v18, %v2394_v17  ;;  %v3510_v25 = vpop.f32.mrb[8].mxu0  ;;  %v4469_v38 = vpop.f32.mrb[8].mxu1  ;;  %3762 = vmatprep.subr.bf16.mxu1 %v3926_v36 }
  0xf6   :  { %v1397_v28 = vpop.f32.mrb[9].mxu0  ;;  %v2398_v39 = vmax.f32 %v3510_v25, 0.0  ;;  %v4475_v42 = vpop.f32.mrb[9].mxu1 }
  0xf7   :  { %v2396_v30 = vmax.f32 %v1397_v28, 0.0  ;;  %v2650_v31 = vadd.f32 %v2649_v24, %v2395_v23  ;;  %v3511_v32 = vpop.f32.mrb[10].mxu0  ;;  %v4477_v43 = vpop.f32.mrb[10].mxu1 }
  0xf8   :  { %v1400_v34 = vpop.f32.mrb[11].mxu0  ;;  %v2399_v45 = vmax.f32 %v3511_v32, 0.0  ;;  %v4482_v48 = vpop.f32.mrb[11].mxu1  ;;  %v3905_v32 = vld [vmem:[%s4626_s0 + $0x208] sm:$0xff]  }
  0xf9   :  { %v2651_v35 = vadd.f32 %v2650_v31, %v2396_v30  ;;  %v2397_v37 = vmax.f32 %v1400_v34, 0.0 }
  0xfa   :  { %3617 = vmatmul.mubr.msk.bf16.gmra.mrb[116].mxu0 %vm946_vm0, %v3893_v29  ;;  %3749 = vmatmul.mubr.msk.bf16.gmra.mrb[116].mxu1 %vm946_vm0, %v3915_v41 }
  0xfb   :  { %v2652_v40 = vadd.f32 %v2651_v35, %v2397_v37  ;;  %3620 = vmatprep.mubr.msk.bf16.mxu0 %vm946_vm0, %v3896_v33  ;;  %3752 = vmatprep.mubr.msk.bf16.mxu1 %vm946_vm0, %v3916_v44 }
  0xfd   :  { %v2653_v46 = vadd.f32 %v2652_v40, %v2398_v39  ;;  %v3514_v47 = vpop.f32.mrb[12].mxu0  ;;  %v4493_v58 = vpop.f32.mrb[12].mxu1 }
  0xfe   :  { %v1413_v49 = vpop.f32.mrb[13].mxu0  ;;  %v2402_v59 = vmax.f32 %v3514_v47, 0.0  ;;  %v4499_v63 = vpop.f32.mrb[13].mxu1 }
  0xff   :  { %v2400_v51 = vmax.f32 %v1413_v49, 0.0  ;;  %v2654_v52 = vadd.f32 %v2653_v46, %v2399_v45  ;;  %v3515_v53 = vpop.f32.mrb[14].mxu0  ;;  %v4501_v2 = vpop.f32.mrb[14].mxu1 }
 0x100   :  { %v1416_v55 = vpop.f32.mrb[15].mxu0  ;;  %v2403_v3 = vmax.f32 %v3515_v53, 0.0  ;;  %v4503_v7 = vpop.f32.mrb[15].mxu1 }
 0x101   :  { %v2655_v56 = vadd.f32 %v2654_v52, %v2400_v51  ;;  %v2401_v57 = vmax.f32 %v1416_v55, 0.0 }
 0x102   :  { %3621 = vmatmul.mubr.msk.bf16.gmra.mrb[120].mxu0 %vm946_vm0, %v3897_v50  ;;  %3753 = vmatmul.mubr.msk.bf16.gmra.mrb[120].mxu1 %vm946_vm0, %v3917_v62 }
 0x103   :  { %v2656_v61 = vadd.f32 %v2655_v56, %v2401_v57  ;;  %3624 = vmatprep.mubr.msk.bf16.mxu0 %vm946_vm0, %v3900_v54  ;;  %3772 = vmatprep.mubr.msk.bf16.mxu1 %vm3927_vm2, %v3926_v36 }
 0x105   :  { %v2657_v4 = vadd.f32 %v2656_v61, %v2402_v59  ;;  %v3518_v5 = vpop.f32.mrb[16].mxu0  ;;  %v4517_v19 = vpop.f32.mrb[16].mxu1 }
 0x106   :  { %v1429_v9 = vpop.f32.mrb[17].mxu0  ;;  %v2406_v22 = vmax.f32 %v3518_v5, 0.0  ;;  %v4520_v24 = vpop.f32.mrb[17].mxu1 }
 0x107   :  { %v2404_v11 = vmax.f32 %v1429_v9, 0.0  ;;  %v2658_v12 = vadd.f32 %v2657_v4, %v2403_v3  ;;  %v3519_v13 = vpop.f32.mrb[18].mxu0  ;;  %v4522_v25 = vpop.f32.mrb[18].mxu1 }
 0x108   :  { %v1432_v15 = vpop.f32.mrb[19].mxu0  ;;  %v2407_v27 = vmax.f32 %v3519_v13, 0.0  ;;  %v4524_v30 = vpop.f32.mrb[19].mxu1 }
 0x109   :  { %v2659_v17 = vadd.f32 %v2658_v12, %v2404_v11  ;;  %v2405_v18 = vmax.f32 %v1432_v15, 0.0 }
 0x10a   :  { %3625 = vmatmul.mubr.msk.bf16.gmra.mrb[124].mxu0 %vm946_vm0, %v3901_v10 }
 0x10b   :  { %v2660_v23 = vadd.f32 %v2659_v17, %v2405_v18  ;;  %3628 = vmatprep.mubr.msk.bf16.mxu0 %vm946_vm0, %v3904_v14 }
 0x10d   :  { %v2661_v28 = vadd.f32 %v2660_v23, %v2406_v22  ;;  %v3522_v29 = vpop.f32.mrb[20].mxu0  ;;  %v4530_v41 = vpop.f32.mrb[20].mxu1 }
 0x10e   :  { %v1445_v31 = vpop.f32.mrb[21].mxu0  ;;  %v2410_v44 = vmax.f32 %v3522_v29, 0.0  ;;  %v4532_v46 = vpop.f32.mrb[21].mxu1 }
 0x10f   :  { %v2408_v33 = vmax.f32 %v1445_v31, 0.0  ;;  %v2662_v34 = vadd.f32 %v2661_v28, %v2407_v27  ;;  %v3523_v35 = vpop.f32.mrb[22].mxu0  ;;  %v4534_v47 = vpop.f32.mrb[22].mxu1 }
 0x110   :  { %v1448_v37 = vpop.f32.mrb[23].mxu0  ;;  %v2411_v49 = vmax.f32 %v3523_v35, 0.0  ;;  %v4536_v52 = vpop.f32.mrb[23].mxu1 }
 0x111   :  { %v2663_v39 = vadd.f32 %v2662_v34, %v2408_v33  ;;  %v2409_v40 = vmax.f32 %v1448_v37, 0.0 }
 0x112   :  { %3629 = vmatmul.mubr.msk.bf16.gmra.mrb[128].mxu0 %vm946_vm0, %v3905_v32 }
 0x113   :  { %v2664_v45 = vadd.f32 %v2663_v39, %v2409_v40 }
 0x115   :  { %v2665_v50 = vadd.f32 %v2664_v45, %v2410_v44  ;;  %v3526_v51 = vpop.f32.mrb[24].mxu0  ;;  %v4538_v62 = vpop.f32.mrb[24].mxu1 }
 0x116   :  { %v1461_v53 = vpop.f32.mrb[25].mxu0  ;;  %v2414_v3 = vmax.f32 %v3526_v51, 0.0  ;;  %v4540_v5 = vpop.f32.mrb[25].mxu1 }
 0x117   :  { %v2412_v54 = vmax.f32 %v1461_v53, 0.0  ;;  %v2666_v55 = vadd.f32 %v2665_v50, %v2411_v49  ;;  %v3527_v56 = vpop.f32.mrb[26].mxu0  ;;  %v4542_v8 = vpop.f32.mrb[26].mxu1 }
 0x118   :  { %v1464_v57 = vpop.f32.mrb[27].mxu0  ;;  %v2415_v9 = vmax.f32 %v3527_v56, 0.0  ;;  %v4544_v12 = vpop.f32.mrb[27].mxu1 }
 0x119   :  { %v2667_v59 = vadd.f32 %v2666_v55, %v2412_v54  ;;  %v2413_v61 = vmax.f32 %v1464_v57, 0.0 }
 0x11b   :  { %v2668_v4 = vadd.f32 %v2667_v59, %v2413_v61 }
 0x11d   :  { %v2669_v10 = vadd.f32 %v2668_v4, %v2414_v3  ;;  %v3530_v11 = vpop.f32.mrb[28].mxu0  ;;  %v3662_v27 = vpop.f32.mrb[28].mxu1 }
 0x11e   :  { %v1477_v13 = vpop.f32.mrb[29].mxu0  ;;  %v2418_v28 = vmax.f32 %v3530_v11, 0.0  ;;  %v2005_v31 = vpop.f32.mrb[29].mxu1  ;;  %v2550_v44 = vmax.f32 %v3662_v27, 0.0 }
 0x11f   :  { %v2416_v14 = vmax.f32 %v1477_v13, 0.0  ;;  %v2670_v15 = vadd.f32 %v2669_v10, %v2415_v9  ;;  %v3531_v17 = vpop.f32.mrb[30].mxu0  ;;  %v2548_v32 = vmax.f32 %v2005_v31, 0.0  ;;  %v3663_v33 = vpop.f32.mrb[30].mxu1 }
 0x120   :  { %v1480_v18 = vpop.f32.mrb[31].mxu0  ;;  %v2419_v34 = vmax.f32 %v3531_v17, 0.0  ;;  %v2008_v39 = vpop.f32.mrb[31].mxu1  ;;  %v2551_v53 = vmax.f32 %v3663_v33, 0.0 }
 0x121   :  { %v2671_v22 = vadd.f32 %v2670_v15, %v2416_v14  ;;  %v2417_v23 = vmax.f32 %v1480_v18, 0.0  ;;  %v2549_v45 = vmax.f32 %v2008_v39, 0.0 }
 0x123   :  { %v2672_v29 = vadd.f32 %v2671_v22, %v2417_v23  ;;  %v2829_v54 = vadd.f32 %v2549_v45, %v2548_v32 }
 0x125   :  { %v2673_v35 = vadd.f32 %v2672_v29, %v2418_v28  ;;  %v3534_v37 = vpop.f32.mrb[32].mxu0  ;;  %v2830_v57 = vadd.f32 %v2829_v54, %v2550_v44  ;;  %v3666_v59 = vpop.f32.mrb[32].mxu1 }
 0x126   :  { %v1493_v40 = vpop.f32.mrb[33].mxu0  ;;  %v2422_v61 = vmax.f32 %v3534_v37, 0.0  ;;  %v2021_v4 = vpop.f32.mrb[33].mxu1  ;;  %v2554_v22 = vmax.f32 %v3666_v59, 0.0 }
 0x127   :  { %v4546_v49 = vadd.f32 %v2673_v35, %v2419_v34  ;;  %v3535_v50 = vpop.f32.mrb[34].mxu0  ;;  %v2420_v55 = vmax.f32 %v1493_v40, 0.0  ;;  %v2552_v9 = vmax.f32 %v2021_v4, 0.0  ;;  %v2831_v10 = vadd.f32 %v2830_v57, %v2551_v53  ;;  %v3667_v11 = vpop.f32.mrb[34].mxu1 }
 0x128   :  { %v1496_v51 = vpop.f32.mrb[35].mxu0  ;;  %v2423_v13 = vmax.f32 %v3535_v50, 0.0  ;;  %v2024_v17 = vpop.f32.mrb[35].mxu1  ;;  %v2555_v33 = vmax.f32 %v3667_v11, 0.0 }
 0x129   :  { %v2421_v56 = vmax.f32 %v1496_v51, 0.0  ;;  %v2832_v23 = vadd.f32 %v2831_v10, %v2552_v9  ;;  %v2553_v27 = vmax.f32 %v2024_v17, 0.0 }
 0x12b   :  { %v2681_v3 = vadd.f32 %v2421_v56, %v2420_v55  ;;  %v2833_v34 = vadd.f32 %v2832_v23, %v2553_v27 }
 0x12d   :  { %v2682_v14 = vadd.f32 %v2681_v3, %v2422_v61  ;;  %v3538_v15 = vpop.f32.mrb[36].mxu0  ;;  %v2834_v39 = vadd.f32 %v2833_v34, %v2554_v22  ;;  %v3670_v40 = vpop.f32.mrb[36].mxu1  ;;  %v3921_v61 = vld [vmem:[%s4627_s2 + $0x18] sm:$0xff]  }
 0x12e   :  { %v1509_v18 = vpop.f32.mrb[37].mxu0  ;;  %v2426_v44 = vmax.f32 %v3538_v15, 0.0  ;;  %v2037_v50 = vpop.f32.mrb[37].mxu1  ;;  %v2558_v4 = vmax.f32 %v3670_v40, 0.0  ;;  %3763 = vmatpush3.bf16.msra.mxu1 %v3921_v61 }
 0x12f   :  { %v2424_v28 = vmax.f32 %v1509_v18, 0.0  ;;  %v2683_v29 = vadd.f32 %v2682_v14, %v2423_v13  ;;  %v3539_v31 = vpop.f32.mrb[38].mxu0  ;;  %v2556_v51 = vmax.f32 %v2037_v50, 0.0  ;;  %v2835_v53 = vadd.f32 %v2834_v39, %v2555_v33  ;;  %v3671_v54 = vpop.f32.mrb[38].mxu1  ;;  %3764 = vmatprep.subr.bf16.mxu1 %v3926_v36 }
 0x130   :  { %v1512_v32 = vpop.f32.mrb[39].mxu0  ;;  %v2427_v55 = vmax.f32 %v3539_v31, 0.0  ;;  %v2040_v59 = vpop.f32.mrb[39].mxu1  ;;  %v2559_v17 = vmax.f32 %v3671_v54, 0.0 }
 0x131   :  { %v2684_v35 = vadd.f32 %v2683_v29, %v2424_v28  ;;  %v2425_v37 = vmax.f32 %v1512_v32, 0.0  ;;  %v2836_v9 = vadd.f32 %v2835_v53, %v2556_v51  ;;  %v2557_v10 = vmax.f32 %v2040_v59, 0.0 }
 0x133   :  { %v2685_v45 = vadd.f32 %v2684_v35, %v2425_v37  ;;  %v2837_v18 = vadd.f32 %v2836_v9, %v2557_v10  ;;  %v3922_v9 = vld [vmem:[%s4627_s2 + $0x20] sm:$0xff]  }
 0x134   :  { %3765 = vmatpush3.bf16.msra.mxu1 %v3922_v9 }
 0x135   :  { %v2686_v56 = vadd.f32 %v2685_v45, %v2426_v44  ;;  %v3542_v57 = vpop.f32.mrb[40].mxu0  ;;  %v2838_v27 = vadd.f32 %v2837_v18, %v2558_v4  ;;  %v3674_v28 = vpop.f32.mrb[40].mxu1  ;;  %3766 = vmatprep.subr.bf16.mxu1 %v3926_v36 }
 0x136   :  { %v1525_v3 = vpop.f32.mrb[41].mxu0  ;;  %v2430_v29 = vmax.f32 %v3542_v57, 0.0  ;;  %v2053_v32 = vpop.f32.mrb[41].mxu1  ;;  %v2562_v50 = vmax.f32 %v3674_v28, 0.0 }
 0x137   :  { %v2428_v11 = vmax.f32 %v1525_v3, 0.0  ;;  %v2687_v13 = vadd.f32 %v2686_v56, %v2427_v55  ;;  %v3543_v14 = vpop.f32.mrb[42].mxu0  ;;  %v2560_v33 = vmax.f32 %v2053_v32, 0.0  ;;  %v2839_v34 = vadd.f32 %v2838_v27, %v2559_v17  ;;  %v3675_v35 = vpop.f32.mrb[42].mxu1 }
 0x138   :  { %v1528_v15 = vpop.f32.mrb[43].mxu0  ;;  %v2431_v37 = vmax.f32 %v3543_v14, 0.0  ;;  %v2056_v44 = vpop.f32.mrb[43].mxu1  ;;  %v2563_v61 = vmax.f32 %v3675_v35, 0.0 }
 0x139   :  { %v2688_v22 = vadd.f32 %v2687_v13, %v2428_v11  ;;  %v2429_v23 = vmax.f32 %v1528_v15, 0.0  ;;  %v2840_v51 = vadd.f32 %v2839_v34, %v2560_v33  ;;  %v2561_v53 = vmax.f32 %v2056_v44, 0.0 }
 0x13b   :  { %v2689_v31 = vadd.f32 %v2688_v22, %v2429_v23  ;;  %v2841_v3 = vadd.f32 %v2840_v51, %v2561_v53 }
 0x13d   :  { %v2690_v39 = vadd.f32 %v2689_v31, %v2430_v29  ;;  %v3546_v40 = vpop.f32.mrb[44].mxu0  ;;  %v2842_v10 = vadd.f32 %v2841_v3, %v2562_v50  ;;  %v3678_v11 = vpop.f32.mrb[44].mxu1 }
 0x13e   :  { %v1541_v45 = vpop.f32.mrb[45].mxu0  ;;  %v2434_v13 = vmax.f32 %v3546_v40, 0.0  ;;  %v2069_v15 = vpop.f32.mrb[45].mxu1  ;;  %v2566_v32 = vmax.f32 %v3678_v11, 0.0 }
 0x13f   :  { %v2432_v54 = vmax.f32 %v1541_v45, 0.0  ;;  %v2691_v55 = vadd.f32 %v2690_v39, %v2431_v37  ;;  %v3547_v56 = vpop.f32.mrb[46].mxu0  ;;  %v2564_v17 = vmax.f32 %v2069_v15, 0.0  ;;  %v2843_v18 = vadd.f32 %v2842_v10, %v2563_v61  ;;  %v3679_v22 = vpop.f32.mrb[46].mxu1 }
 0x140   :  { %v1544_v59 = vpop.f32.mrb[47].mxu0  ;;  %v2435_v23 = vmax.f32 %v3547_v56, 0.0  ;;  %v2072_v29 = vpop.f32.mrb[47].mxu1  ;;  %v2567_v44 = vmax.f32 %v3679_v22, 0.0 }
 0x141   :  { %v2692_v57 = vadd.f32 %v2691_v55, %v2432_v54  ;;  %v2433_v4 = vmax.f32 %v1544_v59, 0.0  ;;  %v2844_v33 = vadd.f32 %v2843_v18, %v2564_v17  ;;  %v2565_v34 = vmax.f32 %v2072_v29, 0.0 }
 0x143   :  { %v2693_v14 = vadd.f32 %v2692_v57, %v2433_v4  ;;  %v2845_v45 = vadd.f32 %v2844_v33, %v2565_v34 }
 0x145   :  { %v2694_v27 = vadd.f32 %v2693_v14, %v2434_v13  ;;  %v3550_v28 = vpop.f32.mrb[48].mxu0  ;;  %v2846_v53 = vadd.f32 %v2845_v45, %v2566_v32  ;;  %v3682_v54 = vpop.f32.mrb[48].mxu1 }
 0x146   :  { %v1557_v31 = vpop.f32.mrb[49].mxu0  ;;  %v2438_v55 = vmax.f32 %v3550_v28, 0.0  ;;  %v2085_v56 = vpop.f32.mrb[49].mxu1  ;;  %v2570_v14 = vmax.f32 %v3682_v54, 0.0 }
 0x147   :  { %v2436_v35 = vmax.f32 %v1557_v31, 0.0  ;;  %v2695_v37 = vadd.f32 %v2694_v27, %v2435_v23  ;;  %v3551_v39 = vpop.f32.mrb[50].mxu0  ;;  %v2568_v61 = vmax.f32 %v2085_v56, 0.0  ;;  %v2847_v3 = vadd.f32 %v2846_v53, %v2567_v44  ;;  %v3683_v57 = vpop.f32.mrb[50].mxu1 }
 0x148   :  { %v1560_v40 = vpop.f32.mrb[51].mxu0  ;;  %v2439_v4 = vmax.f32 %v3551_v39, 0.0  ;;  %v2088_v11 = vpop.f32.mrb[51].mxu1  ;;  %v2571_v29 = vmax.f32 %v3683_v57, 0.0 }
 0x149   :  { %v2696_v50 = vadd.f32 %v2695_v37, %v2436_v35  ;;  %v2437_v51 = vmax.f32 %v1560_v40, 0.0  ;;  %v2848_v15 = vadd.f32 %v2847_v3, %v2568_v61  ;;  %v2569_v17 = vmax.f32 %v2088_v11, 0.0 }
 0x14b   :  { %v2697_v59 = vadd.f32 %v2696_v50, %v2437_v51  ;;  %v2849_v31 = vadd.f32 %v2848_v15, %v2569_v17 }
 0x14d   :  { %v2698_v9 = vadd.f32 %v2697_v59, %v2438_v55  ;;  %v3554_v10 = vpop.f32.mrb[52].mxu0  ;;  %v2850_v33 = vadd.f32 %v2849_v31, %v2570_v14  ;;  %v3686_v34 = vpop.f32.mrb[52].mxu1 }
 0x14e   :  { %v1573_v13 = vpop.f32.mrb[53].mxu0  ;;  %v2442_v35 = vmax.f32 %v3554_v10, 0.0  ;;  %v2101_v39 = vpop.f32.mrb[53].mxu1  ;;  %v2574_v59 = vmax.f32 %v3686_v34, 0.0 }
 0x14f   :  { %v2440_v18 = vmax.f32 %v1573_v13, 0.0  ;;  %v2699_v22 = vadd.f32 %v2698_v9, %v2439_v4  ;;  %v3555_v23 = vpop.f32.mrb[54].mxu0  ;;  %v2572_v40 = vmax.f32 %v2101_v39, 0.0  ;;  %v2851_v44 = vadd.f32 %v2850_v33, %v2571_v29  ;;  %v3687_v45 = vpop.f32.mrb[54].mxu1 }
 0x150   :  { %v1576_v27 = vpop.f32.mrb[55].mxu0  ;;  %v2443_v50 = vmax.f32 %v3555_v23, 0.0  ;;  %v2104_v54 = vpop.f32.mrb[55].mxu1  ;;  %v2575_v11 = vmax.f32 %v3687_v45, 0.0 }
 0x151   :  { %v2700_v28 = vadd.f32 %v2699_v22, %v2440_v18  ;;  %v2441_v32 = vmax.f32 %v1576_v27, 0.0  ;;  %v2852_v56 = vadd.f32 %v2851_v44, %v2572_v40  ;;  %v2573_v61 = vmax.f32 %v2104_v54, 0.0 }
 0x152   :  { %v2675_v44 = vrot.slane %v4546_v49, 4 }
 0x153   :  { %v2701_v37 = vadd.f32 %v2700_v28, %v2441_v32  ;;  %v2853_v13 = vadd.f32 %v2852_v56, %v2573_v61  ;;  %v3923_v61 = vld [vmem:[%s4627_s2 + $0x28] sm:$0xff]  }
 0x154   :  { %3767 = vmatpush3.bf16.msra.mxu1 %v3923_v61 }
 0x155   :  { %v2702_v51 = vadd.f32 %v2701_v37, %v2442_v35  ;;  %v3558_v53 = vpop.f32.mrb[56].mxu0  ;;  %v2854_v15 = vadd.f32 %v2853_v13, %v2574_v59  ;;  %v3690_v17 = vpop.f32.mrb[56].mxu1  ;;  %3768 = vmatprep.subr.bf16.mxu1 %v3926_v36 }
 0x156   :  { %v1589_v55 = vpop.f32.mrb[57].mxu0  ;;  %v2446_v18 = vmax.f32 %v3558_v53, 0.0  ;;  %v2117_v23 = vpop.f32.mrb[57].mxu1  ;;  %v2578_v37 = vmax.f32 %v3690_v17, 0.0 }
 0x157   :  { %v2444_v3 = vmax.f32 %v1589_v55, 0.0  ;;  %v2703_v57 = vadd.f32 %v2702_v51, %v2443_v50  ;;  %v3559_v4 = vpop.f32.mrb[58].mxu0  ;;  %v2576_v27 = vmax.f32 %v2117_v23, 0.0  ;;  %v2855_v29 = vadd.f32 %v2854_v15, %v2575_v11  ;;  %v3691_v31 = vpop.f32.mrb[58].mxu1 }
 0x158   :  { %v1592_v9 = vpop.f32.mrb[59].mxu0  ;;  %v2447_v28 = vmax.f32 %v3559_v4, 0.0  ;;  %v2120_v34 = vpop.f32.mrb[59].mxu1  ;;  %v2579_v53 = vmax.f32 %v3691_v31, 0.0  ;;  %v2676_v4 = vadd.f32 %v2675_v44, %v4546_v49 }
 0x159   :  { %v2704_v10 = vadd.f32 %v2703_v57, %v2444_v3  ;;  %v2445_v14 = vmax.f32 %v1592_v9, 0.0  ;;  %v2856_v39 = vadd.f32 %v2855_v29, %v2576_v27  ;;  %v2577_v40 = vmax.f32 %v2120_v34, 0.0 }
 0x15b   :  { %v2705_v22 = vadd.f32 %v2704_v10, %v2445_v14  ;;  %v2857_v55 = vadd.f32 %v2856_v39, %v2577_v40 }
 0x15d   :  { %v2706_v32 = vadd.f32 %v2705_v22, %v2446_v18  ;;  %v3562_v33 = vpop.f32.mrb[60].mxu0  ;;  %v2858_v3 = vadd.f32 %v2857_v55, %v2578_v37  ;;  %v3694_v57 = vpop.f32.mrb[60].mxu1 }
 0x15e   :  { %v1605_v35 = vpop.f32.mrb[61].mxu0  ;;  %v2450_v9 = vmax.f32 %v3562_v33, 0.0  ;;  %v2133_v13 = vpop.f32.mrb[61].mxu1  ;;  %v2582_v29 = vmax.f32 %v3694_v57, 0.0 }
 0x15f   :  { %v2448_v45 = vmax.f32 %v1605_v35, 0.0  ;;  %v2707_v50 = vadd.f32 %v2706_v32, %v2447_v28  ;;  %v3563_v51 = vpop.f32.mrb[62].mxu0  ;;  %v4561_v10 = vadd.f32 %v2858_v3, %v2579_v53  ;;  %v2580_v14 = vmax.f32 %v2133_v13, 0.0  ;;  %v3695_v15 = vpop.f32.mrb[62].mxu1 }
 0x160   :  { %v1608_v54 = vpop.f32.mrb[63].mxu0  ;;  %v2451_v17 = vmax.f32 %v3563_v51, 0.0  ;;  %v2136_v23 = vpop.f32.mrb[63].mxu1  ;;  %v2677_v28 = vrot.slane %v2676_v4, 2  ;;  %v2583_v34 = vmax.f32 %v3695_v15, 0.0 }
 0x161   :  { %v2708_v59 = vadd.f32 %v2707_v50, %v2448_v45  ;;  %v2449_v56 = vmax.f32 %v1608_v54, 0.0  ;;  %v2581_v31 = vmax.f32 %v2136_v23, 0.0 }
 0x162   :  { %v2678_v50 = vadd.f32 %v2677_v28, %v2676_v4 }
 0x163   :  { %v2709_v11 = vadd.f32 %v2708_v59, %v2449_v56  ;;  %v2866_v35 = vadd.f32 %v2581_v31, %v2580_v14 }
 0x164   :  { %v2679_v23 = vrot.slane %v2678_v50, 1 }
 0x165   :  { %v2710_v18 = vadd.f32 %v2709_v11, %v2450_v9  ;;  %v3566_v22 = vpop.f32.mrb[64].mxu0  ;;  %v2867_v44 = vadd.f32 %v2866_v35, %v2582_v29  ;;  %v3698_v45 = vpop.f32.mrb[64].mxu1 }
 0x166   :  { %v1621_v27 = vpop.f32.mrb[65].mxu0  ;;  %v2454_v51 = vmax.f32 %v3566_v22, 0.0  ;;  %v2149_v55 = vpop.f32.mrb[65].mxu1  ;;  %v2586_v14 = vmax.f32 %v3698_v45, 0.0 }
 0x167   :  { %v2711_v32 = vadd.f32 %v2710_v18, %v2451_v17  ;;  %v3567_v49 = vpop.f32.mrb[66].mxu0  ;;  %v2452_v39 = vmax.f32 %v1621_v27, 0.0  ;;  %v2584_v59 = vmax.f32 %v2149_v55, 0.0  ;;  %v2868_v56 = vadd.f32 %v2867_v44, %v2583_v34  ;;  %v3699_v61 = vpop.f32.mrb[66].mxu1 }
 0x168   :  { %v1624_v33 = vpop.f32.mrb[67].mxu0  ;;  %v2455_v57 = vmax.f32 %v3567_v49, 0.0  ;;  %v2152_v13 = vpop.f32.mrb[67].mxu1  ;;  %v2587_v28 = vmax.f32 %v3699_v61, 0.0 }
 0x169   :  { %v2712_v37 = vrot.slane %v2711_v32, 4  ;;  %v2453_v40 = vmax.f32 %v1624_v33, 0.0  ;;  %v2869_v17 = vadd.f32 %v2868_v56, %v2584_v59  ;;  %v2585_v18 = vmax.f32 %v2152_v13, 0.0 }
 0x16b   :  { %v2713_v54 = vadd.f32 %v2712_v37, %v2711_v32  ;;  %v2718_v53 = vadd.f32 %v2453_v40, %v2452_v39  ;;  %v2870_v32 = vadd.f32 %v2869_v17, %v2585_v18  ;;  %v2680_v39 = vadd.f32 %v2679_v23, %v2678_v50 }
 0x16d   :  { %v2714_v3 = vrot.slane %v2713_v54, 2  ;;  %v2719_v9 = vadd.f32 %v2718_v53, %v2454_v51  ;;  %v3570_v11 = vpop.f32.mrb[68].mxu0  ;;  %v2871_v49 = vadd.f32 %v2870_v32, %v2586_v14  ;;  %v3702_v37 = vpop.f32.mrb[68].mxu1 }
 0x16e   :  { %v1637_v15 = vpop.f32.mrb[69].mxu0  ;;  %v2458_v44 = vmax.f32 %v3570_v11, 0.0  ;;  %v2165_v51 = vpop.f32.mrb[69].mxu1  ;;  %v2590_v13 = vmax.f32 %v3702_v37, 0.0 }
 0x16f   :  { %v2715_v27 = vadd.f32 %v2714_v3, %v2713_v54  ;;  %v2456_v29 = vmax.f32 %v1637_v15, 0.0  ;;  %v2720_v4 = vadd.f32 %v2719_v9, %v2455_v57  ;;  %v3571_v31 = vpop.f32.mrb[70].mxu0  ;;  %v2588_v53 = vmax.f32 %v2165_v51, 0.0  ;;  %v3703_v54 = vpop.f32.mrb[70].mxu1 }
 0x170   :  { %v1640_v22 = vpop.f32.mrb[71].mxu0  ;;  %v2872_v55 = vadd.f32 %v2871_v49, %v2587_v28  ;;  %v2459_v56 = vmax.f32 %v3571_v31, 0.0  ;;  %v2168_v57 = vpop.f32.mrb[71].mxu1  ;;  %v2591_v11 = vmax.f32 %v3703_v54, 0.0 }
 0x171   :  { %v2716_v33 = vrot.slane %v2715_v27, 1  ;;  %v2721_v34 = vadd.f32 %v2720_v4, %v2456_v29  ;;  %v2457_v35 = vmax.f32 %v1640_v22, 0.0  ;;  %v2589_v17 = vmax.f32 %v2168_v57, 0.0 }
 0x172   :  { %v2873_v15 = vadd.f32 %v2872_v55, %v2588_v53 }
 0x173   :  { %v2717_v40 = vadd.f32 %v2716_v33, %v2715_v27  ;;  %v2722_v45 = vadd.f32 %v2721_v34, %v2457_v35 }
 0x174   :  { %v2874_v27 = vadd.f32 %v2873_v15, %v2589_v17 }
 0x175   :  { %v4564_v59 = vsel %vm2948_vm1, %v2717_v40, %v2680_v39  ;;  %v2723_v3 = vadd.f32 %v2722_v45, %v2458_v44  ;;  %v3574_v61 = vpop.f32.mrb[72].mxu0  ;;  %v3706_v28 = vpop.f32.mrb[72].mxu1 }
 0x176   :  { %v1653_v9 = vpop.f32.mrb[73].mxu0  ;;  %v2875_v22 = vadd.f32 %v2874_v27, %v2590_v13  ;;  %v2462_v32 = vmax.f32 %v3574_v61, 0.0  ;;  %v2181_v31 = vpop.f32.mrb[73].mxu1  ;;  %v2594_v51 = vmax.f32 %v3706_v28, 0.0 }
 0x177   :  { %v2460_v14 = vmax.f32 %v1653_v9, 0.0  ;;  %v2724_v18 = vadd.f32 %v2723_v3, %v2459_v56  ;;  %v3575_v50 = vpop.f32.mrb[74].mxu0  ;;  %v2592_v34 = vmax.f32 %v2181_v31, 0.0  ;;  %v3707_v49 = vpop.f32.mrb[74].mxu1 }
 0x178   :  { %v1656_v23 = vpop.f32.mrb[75].mxu0  ;;  %v2876_v35 = vadd.f32 %v2875_v22, %v2591_v11  ;;  %v2463_v39 = vmax.f32 %v3575_v50, 0.0  ;;  %v2184_v44 = vpop.f32.mrb[75].mxu1  ;;  %v2595_v9 = vmax.f32 %v3707_v49, 0.0 }
 0x179   :  { %v2725_v29 = vadd.f32 %v2724_v18, %v2460_v14  ;;  %v2461_v4 = vmax.f32 %v1656_v23, 0.0  ;;  %v2593_v55 = vmax.f32 %v2184_v44, 0.0 }
 0x17a   :  { %v2877_v53 = vadd.f32 %v2876_v35, %v2592_v34 }
 0x17b   :  { %v2726_v33 = vadd.f32 %v2725_v29, %v2461_v4 }
 0x17c   :  { %v2878_v13 = vadd.f32 %v2877_v53, %v2593_v55 }
 0x17d   :  { %v2727_v37 = vadd.f32 %v2726_v33, %v2462_v32  ;;  %v3578_v40 = vpop.f32.mrb[76].mxu0  ;;  %v3710_v14 = vpop.f32.mrb[76].mxu1 }
 0x17e   :  { %v1669_v45 = vpop.f32.mrb[77].mxu0  ;;  %v2879_v17 = vadd.f32 %v2878_v13, %v2594_v51  ;;  %v2466_v18 = vmax.f32 %v3578_v40, 0.0  ;;  %v2197_v50 = vpop.f32.mrb[77].mxu1  ;;  %v2598_v31 = vmax.f32 %v3710_v14, 0.0 }
 0x17f   :  { %v2464_v54 = vmax.f32 %v1669_v45, 0.0  ;;  %v2728_v56 = vadd.f32 %v2727_v37, %v2463_v39  ;;  %v3579_v3 = vpop.f32.mrb[78].mxu0  ;;  %v2596_v11 = vmax.f32 %v2197_v50, 0.0  ;;  %v3711_v29 = vpop.f32.mrb[78].mxu1 }
 0x180   :  { %v1672_v57 = vpop.f32.mrb[79].mxu0  ;;  %v2880_v27 = vadd.f32 %v2879_v17, %v2595_v9  ;;  %v2467_v4 = vmax.f32 %v3579_v3, 0.0  ;;  %v2200_v32 = vpop.f32.mrb[79].mxu1  ;;  %v2599_v45 = vmax.f32 %v3711_v29, 0.0 }
 0x181   :  { %v2729_v61 = vadd.f32 %v2728_v56, %v2464_v54  ;;  %v2465_v15 = vmax.f32 %v1672_v57, 0.0  ;;  %v2597_v35 = vmax.f32 %v2200_v32, 0.0 }
 0x182   :  { %v2881_v34 = vadd.f32 %v2880_v27, %v2596_v11 }
 0x183   :  { %v2730_v23 = vadd.f32 %v2729_v61, %v2465_v15 }
 0x184   :  { %v2882_v51 = vadd.f32 %v2881_v34, %v2597_v35 }
 0x185   :  { %v2731_v22 = vadd.f32 %v2730_v23, %v2466_v18  ;;  %v3582_v28 = vpop.f32.mrb[80].mxu0  ;;  %v3714_v54 = vpop.f32.mrb[80].mxu1 }
 0x186   :  { %v1685_v33 = vpop.f32.mrb[81].mxu0  ;;  %v2883_v55 = vadd.f32 %v2882_v51, %v2598_v31  ;;  %v2470_v56 = vmax.f32 %v3582_v28, 0.0  ;;  %v2213_v3 = vpop.f32.mrb[81].mxu1  ;;  %v2602_v50 = vmax.f32 %v3714_v54, 0.0 }
 0x187   :  { %v2468_v49 = vmax.f32 %v1685_v33, 0.0  ;;  %v2732_v39 = vadd.f32 %v2731_v22, %v2467_v4  ;;  %v3583_v37 = vpop.f32.mrb[82].mxu0  ;;  %v2600_v9 = vmax.f32 %v2213_v3, 0.0  ;;  %v3715_v61 = vpop.f32.mrb[82].mxu1 }
 0x188   :  { %v1688_v44 = vpop.f32.mrb[83].mxu0  ;;  %v2884_v13 = vadd.f32 %v2883_v55, %v2599_v45  ;;  %v2471_v15 = vmax.f32 %v3583_v37, 0.0  ;;  %v2216_v18 = vpop.f32.mrb[83].mxu1  ;;  %v2603_v33 = vmax.f32 %v3715_v61, 0.0 }
 0x189   :  { %v2733_v40 = vadd.f32 %v2732_v39, %v2468_v49  ;;  %v2469_v53 = vmax.f32 %v1688_v44, 0.0  ;;  %v2601_v27 = vmax.f32 %v2216_v18, 0.0  ;;  %v3925_v18 = vld [vmem:[%s4627_s2 + $0x38] sm:$0xff]  }
 0x18a   :  { %v2885_v11 = vadd.f32 %v2884_v13, %v2600_v9 }
 0x18b   :  { %v2734_v57 = vadd.f32 %v2733_v40, %v2469_v53 }
 0x18c   :  { %v2886_v31 = vadd.f32 %v2885_v11, %v2601_v27 }
 0x18d   :  { %v2735_v17 = vadd.f32 %v2734_v57, %v2470_v56  ;;  %v3586_v14 = vpop.f32.mrb[84].mxu0  ;;  %v3718_v49 = vpop.f32.mrb[84].mxu1  ;;  %v3924_v57 = vld [vmem:[%s4627_s2 + $0x30] sm:$0xff]  }
 0x18e   :  { %v1701_v23 = vpop.f32.mrb[85].mxu0  ;;  %v2887_v35 = vadd.f32 %v2886_v31, %v2602_v50  ;;  %v2474_v39 = vmax.f32 %v3586_v14, 0.0  ;;  %v2229_v37 = vpop.f32.mrb[85].mxu1  ;;  %v2606_v9 = vmax.f32 %v3718_v49, 0.0  ;;  %3769 = vmatpush3.bf16.msra.mxu1 %v3924_v57 }
 0x18f   :  { %v2472_v29 = vmax.f32 %v1701_v23, 0.0  ;;  %v2736_v4 = vadd.f32 %v2735_v17, %v2471_v15  ;;  %v3587_v22 = vpop.f32.mrb[86].mxu0  ;;  %v2604_v45 = vmax.f32 %v2229_v37, 0.0  ;;  %v3719_v40 = vpop.f32.mrb[86].mxu1  ;;  %3770 = vmatprep.subr.bf16.mxu1 %v3926_v36 }
 0x190   :  { %v1704_v32 = vpop.f32.mrb[87].mxu0  ;;  %v2888_v51 = vadd.f32 %v2887_v35, %v2603_v33  ;;  %v2475_v53 = vmax.f32 %v3587_v22, 0.0  ;;  %v2232_v56 = vpop.f32.mrb[87].mxu1  ;;  %v2607_v50 = vmax.f32 %v3719_v40, 0.0 }
 0x191   :  { %v2737_v28 = vadd.f32 %v2736_v4, %v2472_v29  ;;  %v2473_v34 = vmax.f32 %v1704_v32, 0.0  ;;  %v2605_v61 = vmax.f32 %v2232_v56, 0.0 }
 0x192   :  { %v2889_v13 = vadd.f32 %v2888_v51, %v2604_v45  ;;  %3771 = vmatpush3.bf16.msra.mxu1 %v3925_v18 }
 0x193   :  { %v2738_v44 = vadd.f32 %v2737_v28, %v2473_v34 }
 0x194   :  { %v2890_v11 = vadd.f32 %v2889_v13, %v2605_v61 }
 0x195   :  { %v2739_v55 = vadd.f32 %v2738_v44, %v2474_v39  ;;  %v3590_v54 = vpop.f32.mrb[88].mxu0  ;;  %v3722_v22 = vpop.f32.mrb[88].mxu1 }
 0x196   :  { %v1717_v3 = vpop.f32.mrb[89].mxu0  ;;  %v2891_v4 = vadd.f32 %v2890_v11, %v2606_v9  ;;  %v2478_v32 = vmax.f32 %v3590_v54, 0.0  ;;  %v2245_v31 = vpop.f32.mrb[89].mxu1  ;;  %v2610_v51 = vmax.f32 %v3722_v22, 0.0 }
 0x197   :  { %v2476_v15 = vmax.f32 %v1717_v3, 0.0  ;;  %v2740_v17 = vadd.f32 %v2739_v55, %v2475_v53  ;;  %v3591_v14 = vpop.f32.mrb[90].mxu0  ;;  %v2608_v28 = vmax.f32 %v2245_v31, 0.0  ;;  %v3723_v35 = vpop.f32.mrb[90].mxu1 }
 0x198   :  { %v1720_v23 = vpop.f32.mrb[91].mxu0  ;;  %v2892_v34 = vadd.f32 %v2891_v4, %v2607_v50  ;;  %v2479_v49 = vmax.f32 %v3591_v14, 0.0  ;;  %v2248_v37 = vpop.f32.mrb[91].mxu1  ;;  %v2611_v3 = vmax.f32 %v3723_v35, 0.0 }
 0x199   :  { %v2741_v27 = vadd.f32 %v2740_v17, %v2476_v15  ;;  %v2477_v29 = vmax.f32 %v1720_v23, 0.0  ;;  %v2609_v53 = vmax.f32 %v2248_v37, 0.0 }
 0x19a   :  { %v2893_v40 = vadd.f32 %v2892_v34, %v2608_v28 }
 0x19b   :  { %v2742_v33 = vadd.f32 %v2741_v27, %v2477_v29 }
 0x19c   :  { %v2894_v54 = vadd.f32 %v2893_v40, %v2609_v53 }
 0x19d   :  { %v2743_v39 = vadd.f32 %v2742_v33, %v2478_v32  ;;  %v3594_v44 = vpop.f32.mrb[92].mxu0  ;;  %v3726_v15 = vpop.f32.mrb[92].mxu1 }
 0x19e   :  { %v1733_v45 = vpop.f32.mrb[93].mxu0  ;;  %v2895_v61 = vadd.f32 %v2894_v54, %v2610_v51  ;;  %v2482_v17 = vmax.f32 %v3594_v44, 0.0  ;;  %v2261_v14 = vpop.f32.mrb[93].mxu1  ;;  %v2614_v33 = vmax.f32 %v3726_v15, 0.0 }
 0x19f   :  { %v2480_v36 = vmax.f32 %v1733_v45, 0.0  ;;  %v2744_v55 = vadd.f32 %v2743_v39, %v2479_v49  ;;  %v3595_v56 = vpop.f32.mrb[94].mxu0  ;;  %v2612_v50 = vmax.f32 %v2261_v14, 0.0  ;;  %v3727_v11 = vpop.f32.mrb[94].mxu1 }
 0x1a0   :  { %v1736_v57 = vpop.f32.mrb[95].mxu0  ;;  %v4574_v23 = vadd.f32 %v2895_v61, %v2611_v3  ;;  %v2483_v27 = vmax.f32 %v3595_v56, 0.0  ;;  %v2264_v22 = vpop.f32.mrb[95].mxu1  ;;  %v2615_v49 = vmax.f32 %v3727_v11, 0.0 }
 0x1a1   :  { %v2745_v9 = vadd.f32 %v2744_v55, %v2480_v36  ;;  %v2481_v13 = vmax.f32 %v1736_v57, 0.0  ;;  %v2613_v31 = vmax.f32 %v2264_v22, 0.0 }
 0x1a3   :  { %v2746_v18 = vadd.f32 %v2745_v9, %v2481_v13  ;;  %v2903_v39 = vadd.f32 %v2613_v31, %v2612_v50 }
 0x1a5   :  { %v2747_v29 = vadd.f32 %v2746_v18, %v2482_v17  ;;  %v3598_v4 = vpop.f32.mrb[96].mxu0  ;;  %v2904_v51 = vadd.f32 %v2903_v39, %v2614_v33  ;;  %v3730_v40 = vpop.f32.mrb[96].mxu1 }
 0x1a6   :  { %v1749_v32 = vpop.f32.mrb[97].mxu0  ;;  %v2486_v36 = vmax.f32 %v3598_v4, 0.0  ;;  %v2277_v56 = vpop.f32.mrb[97].mxu1  ;;  %v2618_v14 = vmax.f32 %v3730_v40, 0.0 }
 0x1a7   :  { %v2748_v28 = vadd.f32 %v2747_v29, %v2483_v27  ;;  %v3599_v34 = vpop.f32.mrb[98].mxu0  ;;  %v2484_v44 = vmax.f32 %v1749_v32, 0.0  ;;  %v2616_v57 = vmax.f32 %v2277_v56, 0.0  ;;  %v2905_v3 = vadd.f32 %v2904_v51, %v2615_v49  ;;  %v3731_v54 = vpop.f32.mrb[98].mxu1 }
 0x1a8   :  { %v1752_v35 = vpop.f32.mrb[99].mxu0  ;;  %v2487_v13 = vmax.f32 %v3599_v34, 0.0  ;;  %v2280_v17 = vpop.f32.mrb[99].mxu1  ;;  %v2619_v4 = vmax.f32 %v3731_v54, 0.0 }
 0x1a9   :  { %v2749_v37 = vrot.slane %v2748_v28, 4  ;;  %v2485_v45 = vmax.f32 %v1752_v35, 0.0  ;;  %v2906_v50 = vadd.f32 %v2905_v3, %v2616_v57  ;;  %v2617_v11 = vmax.f32 %v2280_v17, 0.0 }
 0x1ab   :  { %v2750_v53 = vadd.f32 %v2749_v37, %v2748_v28  ;;  %v2755_v55 = vadd.f32 %v2485_v45, %v2484_v44  ;;  %v2907_v31 = vadd.f32 %v2906_v50, %v2617_v11 }
 0x1ad   :  { %v2751_v9 = vrot.slane %v2750_v53, 2  ;;  %v2756_v61 = vadd.f32 %v2755_v55, %v2486_v36  ;;  %v3602_v15 = vpop.f32.mrb[100].mxu0  ;;  %v2908_v39 = vadd.f32 %v2907_v31, %v2618_v14  ;;  %v3734_v34 = vpop.f32.mrb[100].mxu1 }
 0x1ae   :  { %v1765_v18 = vpop.f32.mrb[101].mxu0  ;;  %v2490_v44 = vmax.f32 %v3602_v15, 0.0  ;;  %v2293_v51 = vpop.f32.mrb[101].mxu1 }
 0x1af   :  { %v2752_v27 = vadd.f32 %v2751_v9, %v2750_v53  ;;  %v2488_v29 = vmax.f32 %v1765_v18, 0.0  ;;  %v2757_v22 = vadd.f32 %v2756_v61, %v2487_v13  ;;  %v3603_v32 = vpop.f32.mrb[102].mxu0  ;;  %v2620_v40 = vmax.f32 %v2293_v51, 0.0  ;;  %v3735_v55 = vpop.f32.mrb[102].mxu1 }
 0x1b0   :  { %v1768_v33 = vpop.f32.mrb[103].mxu0  ;;  %v2909_v36 = vadd.f32 %v2908_v39, %v2619_v4  ;;  %v2491_v56 = vmax.f32 %v3603_v32, 0.0  ;;  %v2296_v54 = vpop.f32.mrb[103].mxu1  ;;  %v2622_v13 = vmax.f32 %v3734_v34, 0.0  ;;  %v2623_v11 = vmax.f32 %v3735_v55, 0.0 }
 0x1b1   :  { %v2753_v28 = vrot.slane %v2752_v27, 1  ;;  %v2758_v35 = vadd.f32 %v2757_v22, %v2488_v29  ;;  %v2489_v49 = vmax.f32 %v1768_v33, 0.0  ;;  %v2621_v17 = vmax.f32 %v2296_v54, 0.0 }
 0x1b2   :  { %v2910_v61 = vadd.f32 %v2909_v36, %v2620_v40 }
 0x1b3   :  { %v2754_v37 = vadd.f32 %v2753_v28, %v2752_v27  ;;  %v2759_v45 = vadd.f32 %v2758_v35, %v2489_v49 }
 0x1b4   :  { %v2911_v27 = vadd.f32 %v2910_v61, %v2621_v17 }
 0x1b5   :  { %v4577_v53 = vsel %vm2950_vm3, %v2754_v37, %v4564_v59  ;;  %v2760_v57 = vadd.f32 %v2759_v45, %v2490_v44  ;;  %v3606_v3 = vpop.f32.mrb[104].mxu0  ;;  %v3738_v4 = vpop.f32.mrb[104].mxu1 }
 0x1b6   :  { %v1781_v9 = vpop.f32.mrb[105].mxu0  ;;  %v2912_v33 = vadd.f32 %v2911_v27, %v2622_v13  ;;  %v2494_v59 = vmax.f32 %v3606_v3, 0.0  ;;  %v2309_v32 = vpop.f32.mrb[105].mxu1  ;;  %v2626_v51 = vmax.f32 %v3738_v4, 0.0 }
 0x1b7   :  { %v2492_v18 = vmax.f32 %v1781_v9, 0.0  ;;  %v2761_v14 = vadd.f32 %v2760_v57, %v2491_v56  ;;  %v3607_v50 = vpop.f32.mrb[106].mxu0  ;;  %v2624_v28 = vmax.f32 %v2309_v32, 0.0  ;;  %v3739_v49 = vpop.f32.mrb[106].mxu1 }
 0x1b8   :  { %v1784_v15 = vpop.f32.mrb[107].mxu0  ;;  %v2913_v35 = vadd.f32 %v2912_v33, %v2623_v11  ;;  %v2495_v39 = vmax.f32 %v3607_v50, 0.0  ;;  %v2312_v44 = vpop.f32.mrb[107].mxu1  ;;  %v2627_v9 = vmax.f32 %v3739_v49, 0.0 }
 0x1b9   :  { %v2762_v29 = vadd.f32 %v2761_v14, %v2492_v18  ;;  %v2493_v22 = vmax.f32 %v1784_v15, 0.0  ;;  %v2625_v36 = vmax.f32 %v2312_v44, 0.0 }
 0x1ba   :  { %v2914_v40 = vadd.f32 %v2913_v35, %v2624_v28 }
 0x1bb   :  { %v2763_v31 = vadd.f32 %v2762_v29, %v2493_v22 }
 0x1bc   :  { %v2915_v13 = vadd.f32 %v2914_v40, %v2625_v36 }
 0x1bd   :  { %v2764_v34 = vadd.f32 %v2763_v31, %v2494_v59  ;;  %v3610_v37 = vpop.f32.mrb[108].mxu0  ;;  %v3742_v18 = vpop.f32.mrb[108].mxu1 }
 0x1be   :  { %v1797_v45 = vpop.f32.mrb[109].mxu0  ;;  %v2916_v17 = vadd.f32 %v2915_v13, %v2626_v51  ;;  %v2498_v14 = vmax.f32 %v3610_v37, 0.0  ;;  %v2325_v50 = vpop.f32.mrb[109].mxu1  ;;  %v2630_v32 = vmax.f32 %v3742_v18, 0.0 }
 0x1bf   :  { %v2496_v55 = vmax.f32 %v1797_v45, 0.0  ;;  %v2765_v56 = vadd.f32 %v2764_v34, %v2495_v39  ;;  %v3611_v57 = vpop.f32.mrb[110].mxu0  ;;  %v2628_v11 = vmax.f32 %v2325_v50, 0.0  ;;  %v3743_v29 = vpop.f32.mrb[110].mxu1 }
 0x1c0   :  { %v1800_v54 = vpop.f32.mrb[111].mxu0  ;;  %v2917_v27 = vadd.f32 %v2916_v17, %v2627_v9  ;;  %v2499_v22 = vmax.f32 %v3611_v57, 0.0  ;;  %v2328_v59 = vpop.f32.mrb[111].mxu1  ;;  %v2631_v45 = vmax.f32 %v3743_v29, 0.0 }
 0x1c1   :  { %v2766_v3 = vadd.f32 %v2765_v56, %v2496_v55  ;;  %v2497_v61 = vmax.f32 %v1800_v54, 0.0  ;;  %v2629_v35 = vmax.f32 %v2328_v59, 0.0 }
 0x1c2   :  { %v2918_v28 = vadd.f32 %v2917_v27, %v2628_v11 }
 0x1c3   :  { %v2767_v15 = vadd.f32 %v2766_v3, %v2497_v61 }
 0x1c4   :  { %v2919_v51 = vadd.f32 %v2918_v28, %v2629_v35 }
 0x1c5   :  { %v2768_v33 = vadd.f32 %v2767_v15, %v2498_v14  ;;  %v3614_v4 = vpop.f32.mrb[112].mxu0  ;;  %v3746_v55 = vpop.f32.mrb[112].mxu1 }
 0x1c6   :  { %v1813_v31 = vpop.f32.mrb[113].mxu0  ;;  %v2920_v36 = vadd.f32 %v2919_v51, %v2630_v32  ;;  %v2502_v56 = vmax.f32 %v3614_v4, 0.0  ;;  %v2341_v57 = vpop.f32.mrb[113].mxu1  ;;  %v2634_v50 = vmax.f32 %v3746_v55, 0.0 }
 0x1c7   :  { %v2500_v49 = vmax.f32 %v1813_v31, 0.0  ;;  %v2769_v39 = vadd.f32 %v2768_v33, %v2499_v22  ;;  %v3615_v34 = vpop.f32.mrb[114].mxu0  ;;  %v2632_v9 = vmax.f32 %v2341_v57, 0.0  ;;  %v3747_v3 = vpop.f32.mrb[114].mxu1 }
 0x1c8   :  { %v1816_v44 = vpop.f32.mrb[115].mxu0  ;;  %v2921_v13 = vadd.f32 %v2920_v36, %v2631_v45  ;;  %v2503_v61 = vmax.f32 %v3615_v34, 0.0  ;;  %v2344_v14 = vpop.f32.mrb[115].mxu1  ;;  %v2635_v31 = vmax.f32 %v3747_v3, 0.0 }
 0x1c9   :  { %v2770_v37 = vadd.f32 %v2769_v39, %v2500_v49  ;;  %v2501_v40 = vmax.f32 %v1816_v44, 0.0  ;;  %v2633_v27 = vmax.f32 %v2344_v14, 0.0 }
 0x1ca   :  { %v2922_v11 = vadd.f32 %v2921_v13, %v2632_v9 }
 0x1cb   :  { %v2771_v54 = vadd.f32 %v2770_v37, %v2501_v40 }
 0x1cc   :  { %v2923_v32 = vadd.f32 %v2922_v11, %v2633_v27 }
 0x1cd   :  { %v2772_v17 = vadd.f32 %v2771_v54, %v2502_v56  ;;  %v3618_v18 = vpop.f32.mrb[116].mxu0  ;;  %v3750_v49 = vpop.f32.mrb[116].mxu1 }
 0x1ce   :  { %v1829_v15 = vpop.f32.mrb[117].mxu0  ;;  %v2924_v35 = vadd.f32 %v2923_v32, %v2634_v50  ;;  %v2506_v39 = vmax.f32 %v3618_v18, 0.0  ;;  %v2357_v34 = vpop.f32.mrb[117].mxu1  ;;  %v2638_v57 = vmax.f32 %v3750_v49, 0.0 }
 0x1cf   :  { %v2504_v29 = vmax.f32 %v1829_v15, 0.0  ;;  %v2773_v22 = vadd.f32 %v2772_v17, %v2503_v61  ;;  %v3619_v33 = vpop.f32.mrb[118].mxu0  ;;  %v2636_v45 = vmax.f32 %v2357_v34, 0.0  ;;  %v3751_v37 = vpop.f32.mrb[118].mxu1 }
 0x1d0   :  { %v1832_v59 = vpop.f32.mrb[119].mxu0  ;;  %v2925_v51 = vadd.f32 %v2924_v35, %v2635_v31  ;;  %v2507_v40 = vmax.f32 %v3619_v33, 0.0  ;;  %v2360_v56 = vpop.f32.mrb[119].mxu1  ;;  %v2639_v15 = vmax.f32 %v3751_v37, 0.0 }
 0x1d1   :  { %v2774_v4 = vadd.f32 %v2773_v22, %v2504_v29  ;;  %v2505_v28 = vmax.f32 %v1832_v59, 0.0  ;;  %v2637_v13 = vmax.f32 %v2360_v56, 0.0 }
 0x1d2   :  { %v2926_v9 = vadd.f32 %v2925_v51, %v2636_v45 }
 0x1d3   :  { %v2775_v44 = vadd.f32 %v2774_v4, %v2505_v28 }
 0x1d4   :  { %v2927_v50 = vadd.f32 %v2926_v9, %v2637_v13 }
 0x1d5   :  { %v2776_v36 = vadd.f32 %v2775_v44, %v2506_v39  ;;  %v3622_v55 = vpop.f32.mrb[120].mxu0  ;;  %v3754_v29 = vpop.f32.mrb[120].mxu1 }
 0x1d6   :  { %v1845_v54 = vpop.f32.mrb[121].mxu0  ;;  %v2928_v27 = vadd.f32 %v2927_v50, %v2638_v57  ;;  %v2510_v22 = vmax.f32 %v3622_v55, 0.0  ;;  %v2373_v33 = vpop.f32.mrb[121].mxu1  ;;  %v2642_v34 = vmax.f32 %v3754_v29, 0.0 }
 0x1d7   :  { %v2508_v3 = vmax.f32 %v1845_v54, 0.0  ;;  %v2777_v61 = vadd.f32 %v2776_v36, %v2507_v40  ;;  %v3623_v17 = vpop.f32.mrb[122].mxu0  ;;  %v2640_v31 = vmax.f32 %v2373_v33, 0.0  ;;  %v3755_v4 = vpop.f32.mrb[122].mxu1 }
 0x1d8   :  { %v1848_v14 = vpop.f32.mrb[123].mxu0  ;;  %v2929_v32 = vadd.f32 %v2928_v27, %v2639_v15  ;;  %v2511_v28 = vmax.f32 %v3623_v17, 0.0  ;;  %v2376_v39 = vpop.f32.mrb[123].mxu1  ;;  %v2643_v54 = vmax.f32 %v3755_v4, 0.0 }
 0x1d9   :  { %v2778_v18 = vadd.f32 %v2777_v61, %v2508_v3  ;;  %v2509_v11 = vmax.f32 %v1848_v14, 0.0  ;;  %v2641_v51 = vmax.f32 %v2376_v39, 0.0 }
 0x1da   :  { %v2930_v45 = vadd.f32 %v2929_v32, %v2640_v31 }
 0x1db   :  { %v2779_v59 = vadd.f32 %v2778_v18, %v2509_v11 }
 0x1dc   :  { %v2931_v57 = vadd.f32 %v2930_v45, %v2641_v51  ;;  %v2521_v45 = vmax.f32 %v4430_v6, 0.0  ;;  %v2526_v6 = vmax.f32 %v4441_v16, 0.0  ;;  %v2533_v16 = vmax.f32 %v4503_v7, 0.0 }
 0x1dd   :  { %v2780_v35 = vadd.f32 %v2779_v59, %v2510_v22  ;;  %v3626_v49 = vpop.f32.mrb[124].mxu0  ;;  %v2540_v7 = vmax.f32 %v4532_v46, 0.0 }
 0x1de   :  { %v1861_v44 = vpop.f32.mrb[125].mxu0  ;;  %v2932_v13 = vadd.f32 %v2931_v57, %v2642_v34  ;;  %v2514_v3 = vmax.f32 %v3626_v49, 0.0  ;;  %v2520_v49 = vmax.f32 %v4423_v0, 0.0 }
 0x1df   :  { %v2512_v37 = vmax.f32 %v1861_v44, 0.0  ;;  %v2781_v40 = vadd.f32 %v2780_v35, %v2511_v28  ;;  %v3627_v36 = vpop.f32.mrb[126].mxu0 }
 0x1e0   :  { %v1864_v56 = vpop.f32.mrb[127].mxu0  ;;  %v4579_v14 = vadd.f32 %v2932_v13, %v2643_v54  ;;  %v2515_v17 = vmax.f32 %v3627_v36, 0.0  ;;  %v2523_v54 = vmax.f32 %v4425_v1, 0.0  ;;  %v2525_v13 = vmax.f32 %v4454_v26, 0.0 }
 0x1e1   :  { %v2782_v55 = vadd.f32 %v2781_v40, %v2512_v37  ;;  %v2513_v9 = vmax.f32 %v1864_v56, 0.0  ;;  %v2522_v40 = vmax.f32 %v4417_v60, 0.0  ;;  %v2529_v1 = vmax.f32 %v4482_v48, 0.0 }
 0x1e2   :  { %v2532_v26 = vmax.f32 %v4499_v63, 0.0  ;;  %v2536_v48 = vmax.f32 %v4520_v24, 0.0  ;;  %v2539_v63 = vmax.f32 %v4522_v25, 0.0  ;;  %v2543_v24 = vmax.f32 %v4534_v47, 0.0 }
 0x1e3   :  { %v2783_v61 = vadd.f32 %v2782_v55, %v2513_v9  ;;  %v2524_v9 = vmax.f32 %v4447_v20, 0.0  ;;  %v2531_v20 = vmax.f32 %v4477_v43, 0.0  ;;  %v2538_v43 = vmax.f32 %v4517_v19, 0.0 }
 0x1e4   :  { %v2860_v19 = vrot.slane %v4561_v10, 4  ;;  %v2545_v25 = vmax.f32 %v4544_v12, 0.0  ;;  %v2547_v47 = vmax.f32 %v4542_v8, 0.0 }
 0x1e5   :  { %v2784_v15 = vadd.f32 %v2783_v61, %v2514_v3  ;;  %v3630_v50 = vpop.f32.mrb[128].mxu0 }
 0x1e6   :  { %v1877_v18 = vpop.f32.mrb[129].mxu0  ;;  %v2518_v32 = vmax.f32 %v3630_v50, 0.0 }
 0x1e7   :  { %v2785_v11 = vadd.f32 %v2784_v15, %v2515_v17  ;;  %v3631_v27 = vpop.f32.mrb[130].mxu0  ;;  %v2516_v59 = vmax.f32 %v1877_v18, 0.0  ;;  %v2527_v17 = vmax.f32 %v4449_v21, 0.0  ;;  %v2528_v15 = vmax.f32 %v4475_v42, 0.0 }
 0x1e8   :  { %v1880_v29 = vpop.f32.mrb[131].mxu0  ;;  %v2519_v35 = vmax.f32 %v3631_v27, 0.0  ;;  %v2530_v18 = vmax.f32 %v4469_v38, 0.0  ;;  %v2534_v21 = vmax.f32 %v4493_v58, 0.0  ;;  %v2535_v42 = vmax.f32 %v4501_v2, 0.0 }
 0x1e9   :  { %v2786_v22 = vrot.slane %v2785_v11, 4  ;;  %v2517_v33 = vmax.f32 %v1880_v29, 0.0  ;;  %v2537_v38 = vmax.f32 %v4524_v30, 0.0  ;;  %v2541_v58 = vmax.f32 %v4536_v52, 0.0 }
 0x1ea   :  { %v2542_v2 = vmax.f32 %v4530_v41, 0.0  ;;  %v2544_v30 = vmax.f32 %v4540_v5, 0.0  ;;  %v2546_v52 = vmax.f32 %v4538_v62, 0.0  ;;  %v2861_v41 = vadd.f32 %v2860_v19, %v4561_v10 }
 0x1eb   :  { %v2787_v31 = vadd.f32 %v2786_v22, %v2785_v11  ;;  %v2792_v4 = vadd.f32 %v2517_v33, %v2516_v59 }
 0x1ed   :  { %v2788_v28 = vrot.slane %v2787_v31, 2  ;;  %v2793_v39 = vadd.f32 %v2792_v4, %v2518_v32 }
 0x1ef   :  { %v2789_v44 = vadd.f32 %v2788_v28, %v2787_v31  ;;  %v2794_v34 = vadd.f32 %v2793_v39, %v2519_v35 }
 0x1f1   :  { %v2790_v51 = vrot.slane %v2789_v44, 1  ;;  %v2795_v37 = vadd.f32 %v2794_v34, %v2520_v49 }
 0x1f3   :  { %v2791_v36 = vadd.f32 %v2790_v51, %v2789_v44  ;;  %v2796_v56 = vadd.f32 %v2795_v37, %v2521_v45  ;;  %v2897_v45 = vrot.slane %v4574_v23, 4  ;;  %v2934_v51 = vrot.slane %v4579_v14, 4 }
 0x1f5   :  { %v4586_v57 = vsel %vm2952_vm4, %v2791_v36, %v4577_v53  ;;  %v2797_v55 = vadd.f32 %v2796_v56, %v2522_v40  ;;  %v2898_v40 = vadd.f32 %v2897_v45, %v4574_v23  ;;  %v2935_v36 = vadd.f32 %v2934_v51, %v4579_v14 }
 0x1f7   :  { %v2798_v0 = vadd.f32 %v2797_v55, %v2523_v54  ;;  %v2862_v54 = vrot.slane %v2861_v41, 2  ;;  %v2899_v12 = vrot.slane %v2898_v40, 2 }
 0x1f9   :  { %v2799_v3 = vadd.f32 %v2798_v0, %v2524_v9  ;;  %v2936_v9 = vrot.slane %v2935_v36, 2 }
 0x1fb   :  { %v2800_v61 = vadd.f32 %v2799_v3, %v2525_v13  ;;  %v2863_v13 = vadd.f32 %v2862_v54, %v2861_v41  ;;  %v2900_v3 = vadd.f32 %v2899_v12, %v2898_v40  ;;  %v2937_v62 = vadd.f32 %v2936_v9, %v2935_v36 }
 0x1fd   :  { %v2801_v60 = vadd.f32 %v2800_v61, %v2526_v6  ;;  %v2901_v10 = vrot.slane %v2900_v3, 1  ;;  %v2938_v8 = vrot.slane %v2937_v62, 1 }
 0x1ff   :  { %v2802_v50 = vadd.f32 %v2801_v60, %v2527_v17  ;;  %v2864_v17 = vrot.slane %v2863_v13, 1  ;;  %v2902_v14 = vadd.f32 %v2901_v10, %v2900_v3 }
 0x201   :  { %v2803_v53 = vadd.f32 %v2802_v50, %v2528_v15  ;;  %v2865_v15 = vadd.f32 %v2864_v17, %v2863_v13 }
 0x203   :  { %v2804_v11 = vadd.f32 %v2803_v53, %v2529_v1  ;;  %v2939_v1 = vadd.f32 %v2938_v8, %v2937_v62 }
 0x205   :  { %v2805_v27 = vadd.f32 %v2804_v11, %v2530_v18 }
 0x207   :  { %v2806_v29 = vadd.f32 %v2805_v27, %v2531_v20  ;;  %v3342_v27 = vld [vmem:[%s4628_s3] ss:$0 sm:$0xff] }
 0x209   :  { %v2807_v22 = vadd.f32 %v2806_v29, %v2532_v26 }
 0x20b   :  { %v2808_v59 = vadd.f32 %v2807_v22, %v2533_v16 }
 0x20d   :  { %v2809_v33 = vadd.f32 %v2808_v59, %v2534_v21 }
 0x20f   :  { %v2810_v31 = vadd.f32 %v2809_v33, %v2535_v42 }
 0x211   :  { %v2811_v32 = vadd.f32 %v2810_v31, %v2536_v48 }
 0x213   :  { %v2812_v4 = vadd.f32 %v2811_v32, %v2537_v38 }
 0x215   :  { %v2813_v28 = vadd.f32 %v2812_v4, %v2538_v43 }
 0x217   :  { %v2814_v35 = vadd.f32 %v2813_v28, %v2539_v63 }
 0x219   :  { %v2815_v39 = vadd.f32 %v2814_v35, %v2540_v7 }
 0x21b   :  { %v2816_v49 = vadd.f32 %v2815_v39, %v2541_v58 }
 0x21d   :  { %v2817_v44 = vadd.f32 %v2816_v49, %v2542_v2 }
 0x21f   :  { %v2818_v34 = vadd.f32 %v2817_v44, %v2543_v24 }
 0x221   :  { %v2819_v46 = vadd.f32 %v2818_v34, %v2544_v30 }
 0x223   :  { %v2820_v37 = vadd.f32 %v2819_v46, %v2545_v25 }
 0x225   :  { %v2821_v5 = vadd.f32 %v2820_v37, %v2546_v52 }
 0x227   :  { %v2822_v56 = vadd.f32 %v2821_v5, %v2547_v47 }
 0x229   :  { %v2823_v55 = vrot.slane %v2822_v56, 4 }
 0x22b   :  { %v2824_v0 = vadd.f32 %v2823_v55, %v2822_v56 }
 0x22d   :  { %v2825_v6 = vrot.slane %v2824_v0, 2 }
 0x22f   :  { %v2826_v61 = vadd.f32 %v2825_v6, %v2824_v0 }
 0x231   :  { %v2827_v60 = vrot.slane %v2826_v61, 1 }
 0x233   :  { %v2828_v23 = vadd.f32 %v2827_v60, %v2826_v61 }
 0x235   :  { %v2955_v50 = vsel %vm2954_vm5, %v2828_v23, %v4586_v57 }
 0x236   :  { %v2957_v53 = vsel %vm2956_vm6, %v2865_v15, %v2955_v50 }
 0x237   :  { %v2959_v18 = vsel %vm2958_vm7, %v2902_v14, %v2957_v53 }
 0x238   :  { %v2961_v11 = vsel %vm2960_vm8, %v2939_v1, %v2959_v18 }
 0x239   :  { %v2965_v20 = vpack.c.bf16 %v2961_v11, %v2961_v11 }
 0x23b   :  { %3773 = vmatmul.mubr.bf16.vlgmr.msra.gmra.mrb[124].mxu1 %v2965_v20 }
 0x30e   :  { %v3071_v26 = vpop.f32.mrb[124].mxu1 }
 0x30f   :  { %v3072_v29 = vadd.f32 %v3342_v27, %v3071_v26  ;;  %v3774_v16 = vpop.f32.mrb[125].mxu1 }
 0x310   :  { %v3074_v22 = vpop.f32.mrb[126].mxu1 }
 0x311   :  { %3077 = vst [vmem:[%s4629_s4] sm:$0xff] %v3072_v29  ;;  %v3775_v57 = vpop.f32.mrb[127].mxu1 }

</bundles_post_ra>
